<compile_context>
chip_gen: v7x
topology: tpu7x:2x2x1
jax: 0.10.0
libtpu: 0.0.40
codegen_flags: <defaults>
</compile_context>

<pallas_src>
import functools

import jax
import jax.numpy as jnp
from jax.experimental import pallas as pl
from jax.experimental.pallas import tpu as pltpu

_LANES = 128


def _elu(x):
    # ELU (alpha=1.0, matches F.elu default). min() keeps the discarded branch
    # of jnp.where from overflowing in exp.
    # TODO(synk): switch to jnp.expm1 if/when its Mosaic lowering is guaranteed.
    return jnp.where(x > 0, x, jnp.exp(jnp.minimum(x, 0.0)) - 1.0)


def _round_up(n, m):
    return ((n + m - 1) // m) * m


def mlp_kernel(x_ref, w1_ref, b1_ref, w2_ref, b2_ref, w3_ref, b3_ref, o_ref,
               *, use_bf16_matmul):
    x = x_ref[...]                      # (tile_b, in_dim) f32
    in_dim = x.shape[1]
    w1 = w1_ref[...]                    # (in_dim, hid) f32

    # ---- layer 1 (K = in_dim, e.g. 3): broadcast FMAs on the VPU, not the MXU.
    h1 = b1_ref[...] + x[:, 0:1] * w1[0:1, :]
    for k in range(1, in_dim):          # static tiny loop
        h1 = h1 + x[:, k:k + 1] * w1[k:k + 1, :]
    h1 = _elu(h1)

    # ---- layer 2 (hid x hid): the only big MXU matmul. bf16 inputs / f32 acc
    # by default (MXU is bf16-native on v5e/v6e/v7x).
    if use_bf16_matmul:
        h2 = jnp.dot(h1.astype(jnp.bfloat16), w2_ref[...],
                     preferred_element_type=jnp.float32)
    else:
        h2 = jnp.dot(h1, w2_ref[...], preferred_element_type=jnp.float32)
    h2 = _elu(h2 + b2_ref[...])

    # ---- layer 3 (N = 1): feed the 128-wide reduce to the (underused) MXU and
    # store the (tile_b, 1) column directly -- no XLU reduce / scalar relayout.
    y = jnp.dot(h2, w3_ref[...], preferred_element_type=jnp.float32) + b3_ref[0]
    o_ref[...] = y


def _tpu_caps():
    """Return (tensorcores_per_chip, tile_b_cap_rows, vmem_limit_bytes)."""
    try:
        kind = jax.devices()[0].device_kind.lower()
    except Exception:
        kind = ""
    if "v7" in kind or "7x" in kind:
        # v7x: 2 TCs / chip, 64 MiB physical VMEM per TC.
        return 2, 4096, 48 * 1024 * 1024
    if "v4" in kind or "v5p" in kind:
        # megacore: 2 TCs, 128 MiB VMEM.
        return 2, 8192, 64 * 1024 * 1024
    if "v5" in kind or "v6" in kind:
        # v5e / v6e: 1 TC, 128 MiB VMEM.
        return 1, 8192, 64 * 1024 * 1024
    # Unknown backend: conservative defaults.
    return 1, 4096, 32 * 1024 * 1024


def _pick_tiling(B, num_cores, tile_cap):
    """Choose (tile_b, B_pad, grid_n): big tiles, even grid on 2-TC chips."""
    B_min = _round_up(B, _LANES)
    grid_n = max(1, pl.cdiv(B_min, tile_cap))
    if num_cores > 1:
        # Keep the grid a multiple of the core count so both TCs stay busy.
        grid_n = _round_up(max(grid_n, num_cores), num_cores)
    tile_b = _round_up(pl.cdiv(B_min, grid_n), _LANES)
    return tile_b, grid_n * tile_b, grid_n


def mlp_forward(x, params, *, tile_b=None, use_bf16_matmul=True):
    """x: (B, input_size) float32.  params: dict of w1,b1,w2,b2,w3,b3."""
    w1, b1 = params["w1"], params["b1"]
    w2, b2 = params["w2"], params["b2"]
    w3, b3 = params["w3"], params["b3"]
    B, in_dim = x.shape
    hid = w1.shape[1]
    out_dim = w3.shape[1]
    assert out_dim == 1, "kernel specializes fc3 (output_size=1) as an MXU column dot"
    assert hid % _LANES == 0

    num_cores, tile_cap, vmem_limit = _tpu_caps()
    if tile_b is None:
        tile_b, B_pad, grid_n = _pick_tiling(B, num_cores, tile_cap)
    else:
        assert tile_b % _LANES == 0, "tile_b must be a multiple of 128"
        B_pad = _round_up(B, tile_b)
        grid_n = B_pad // tile_b

    if B_pad != B:
        x = jnp.pad(x, ((0, B_pad - B), (0, 0)))

    w2_in = w2.astype(jnp.bfloat16) if use_bf16_matmul else w2
    b3_s = b3.reshape(1)          # scalar bias via SMEM

    kernel = functools.partial(mlp_kernel, use_bf16_matmul=use_bf16_matmul)

    out = pl.pallas_call(
        kernel,
        out_shape=jax.ShapeDtypeStruct((B_pad, 1), jnp.float32),
        grid_spec=pltpu.PrefetchScalarGridSpec(
            num_scalar_prefetch=0,
            grid=(grid_n,),
            in_specs=[
                pl.BlockSpec((tile_b, in_dim), lambda i: (i, 0)),    # x tile
                pl.BlockSpec((in_dim, hid), lambda i: (0, 0)),       # w1 (resident)
                pl.BlockSpec((1, hid), lambda i: (0, 0)),            # b1
                pl.BlockSpec((hid, hid), lambda i: (0, 0)),          # w2
                pl.BlockSpec((1, hid), lambda i: (0, 0)),            # b2
                pl.BlockSpec((hid, 1), lambda i: (0, 0)),            # w3 column
                pl.BlockSpec(memory_space=pltpu.MemorySpace.SMEM),   # b3 scalar
            ],
            out_specs=pl.BlockSpec((tile_b, 1), lambda i: (i, 0)),
        ),
        compiler_params=pltpu.CompilerParams(
            dimension_semantics=("parallel",),
            vmem_limit_bytes=vmem_limit,
        ),
    )(x, w1, b1, w2_in, b2, w3, b3_s)

    return out if B_pad == B else out[:B]


def init_params(key, input_size=3, hidden_size=128, output_size=1):
    """Deterministic Xavier-normal weights, zero biases (matches module __init__)."""
    k1, k2, k3 = jax.random.split(key, 3)

    def xavier_normal(k, fan_in, fan_out):
        std = (2.0 / (fan_in + fan_out)) ** 0.5
        return std * jax.random.normal(k, (fan_in, fan_out), dtype=jnp.float32)

    return {
        "w1": xavier_normal(k1, input_size, hidden_size),
        "b1": jnp.zeros((1, hidden_size), jnp.float32),
        "w2": xavier_normal(k2, hidden_size, hidden_size),
        "b2": jnp.zeros((1, hidden_size), jnp.float32),
        "w3": xavier_normal(k3, hidden_size, output_size),
        "b3": jnp.zeros((1, output_size), jnp.float32),
    }


def mlp_reference(x, params):
    h1 = _elu(x @ params["w1"] + params["b1"])
    h2 = _elu(h1 @ params["w2"] + params["b2"])
    return h2 @ params["w3"] + params["b3"]


if __name__ == "__main__":
    key = jax.random.PRNGKey(0)
    kx, kp = jax.random.split(key)

    # Small shapes consistent with the module; batch intentionally not a
    # multiple of 128 to exercise the padding / tail-slice path.
    batch = 200
    input_size, hidden_size, output_size = 3, 128, 1

    x = jax.random.normal(kx, (batch, input_size), dtype=jnp.float32)
    params = init_params(kp, input_size, hidden_size, output_size)

    ref = mlp_reference(x, params)

    # Default path: bf16 MXU inputs, f32 accumulation (looser tolerance).
    out = jax.block_until_ready(mlp_forward(x, params))
    assert out.shape == (batch, output_size)
    assert jnp.allclose(out, ref, atol=2e-2, rtol=2e-2), "bf16 path mismatch vs reference"

    # Exact-f32 path sanity check (tight tolerance).
    out_f32 = jax.block_until_ready(mlp_forward(x, params, use_bf16_matmul=False))
    assert jnp.allclose(out_f32, ref, atol=1e-4, rtol=1e-4), "f32 path mismatch vs reference"

    print("KERNEL_OK")
</pallas_src>

<mosaic_0001>
module attributes {stable_mosaic.version = 11 : i64} {
  func.func @mlp_kernel(%arg0: i32, %arg1: memref<256x3xf32, #tpu.memory_space<vmem>>, %arg2: memref<3x128xf32, #tpu.memory_space<vmem>>, %arg3: memref<1x128xf32, #tpu.memory_space<vmem>>, %arg4: memref<128x128xbf16, #tpu.memory_space<vmem>>, %arg5: memref<1x128xf32, #tpu.memory_space<vmem>>, %arg6: memref<128x1xf32, #tpu.memory_space<vmem>>, %arg7: memref<1xf32, #tpu.memory_space<smem>>, %arg8: memref<256x1xf32, #tpu.memory_space<vmem>>) attributes {dimension_semantics = [#tpu.dimension_semantics<parallel>], iteration_bounds = array<i64: 1>, scalar_prefetch = 0 : i64, scratch_operands = 0 : i64, tpu.core_type = #tpu.core_type<tc>, window_params = [{transform_indices = @transform_0, window_bounds = array<i64: 256, 3>}, {pipeline_mode = #tpu.pipeline_mode<synchronous>, transform_indices = @transform_1, window_bounds = array<i64: 3, 128>}, {pipeline_mode = #tpu.pipeline_mode<synchronous>, transform_indices = @transform_2, window_bounds = array<i64: 1, 128>}, {pipeline_mode = #tpu.pipeline_mode<synchronous>, transform_indices = @transform_3, window_bounds = array<i64: 128, 128>}, {pipeline_mode = #tpu.pipeline_mode<synchronous>, transform_indices = @transform_4, window_bounds = array<i64: 1, 128>}, {pipeline_mode = #tpu.pipeline_mode<synchronous>, transform_indices = @transform_5, window_bounds = array<i64: 128, 1>}, {transform_indices = @transform_6, window_bounds = array<i64: 1>}, {transform_indices = @transform_7, window_bounds = array<i64: 256, 1>}]} {
    %c0 = arith.constant 0 : index
    %c0_0 = arith.constant 0 : index
    %0 = vector.load %arg1[%c0, %c0_0] : memref<256x3xf32, #tpu.memory_space<vmem>>, vector<256x3xf32>
    %c0_1 = arith.constant 0 : index
    %c0_2 = arith.constant 0 : index
    %1 = vector.load %arg2[%c0_1, %c0_2] : memref<3x128xf32, #tpu.memory_space<vmem>>, vector<3x128xf32>
    %c0_3 = arith.constant 0 : index
    %c0_4 = arith.constant 0 : index
    %2 = vector.load %arg3[%c0_3, %c0_4] : memref<1x128xf32, #tpu.memory_space<vmem>>, vector<1x128xf32>
    %3 = vector.extract_strided_slice %0 {offsets = [0, 0], sizes = [256, 1], strides = [1, 1]} : vector<256x3xf32> to vector<256x1xf32>
    %4 = vector.extract_strided_slice %1 {offsets = [0, 0], sizes = [1, 128], strides = [1, 1]} : vector<3x128xf32> to vector<1x128xf32>
    %5 = vector.broadcast %3 : vector<256x1xf32> to vector<256x128xf32>
    %6 = vector.broadcast %4 : vector<1x128xf32> to vector<256x128xf32>
    %7 = arith.mulf %5, %6 : vector<256x128xf32>
    %8 = vector.broadcast %2 : vector<1x128xf32> to vector<256x128xf32>
    %9 = arith.addf %8, %7 : vector<256x128xf32>
    %10 = vector.extract_strided_slice %0 {offsets = [0, 1], sizes = [256, 1], strides = [1, 1]} : vector<256x3xf32> to vector<256x1xf32>
    %11 = vector.extract_strided_slice %1 {offsets = [1, 0], sizes = [1, 128], strides = [1, 1]} : vector<3x128xf32> to vector<1x128xf32>
    %12 = vector.broadcast %10 : vector<256x1xf32> to vector<256x128xf32>
    %13 = vector.broadcast %11 : vector<1x128xf32> to vector<256x128xf32>
    %14 = arith.mulf %12, %13 : vector<256x128xf32>
    %15 = arith.addf %9, %14 : vector<256x128xf32>
    %16 = vector.extract_strided_slice %0 {offsets = [0, 2], sizes = [256, 1], strides = [1, 1]} : vector<256x3xf32> to vector<256x1xf32>
    %17 = vector.extract_strided_slice %1 {offsets = [2, 0], sizes = [1, 128], strides = [1, 1]} : vector<3x128xf32> to vector<1x128xf32>
    %18 = vector.broadcast %16 : vector<256x1xf32> to vector<256x128xf32>
    %19 = vector.broadcast %17 : vector<1x128xf32> to vector<256x128xf32>
    %20 = arith.mulf %18, %19 : vector<256x128xf32>
    %21 = arith.addf %15, %20 : vector<256x128xf32>
    %cst = arith.constant 0.000000e+00 : f32
    %22 = vector.broadcast %cst : f32 to vector<256x128xf32>
    %23 = arith.cmpf ogt, %21, %22 : vector<256x128xf32>
    %cst_5 = arith.constant 0.000000e+00 : f32
    %24 = vector.broadcast %cst_5 : f32 to vector<256x128xf32>
    %25 = arith.minimumf %21, %24 : vector<256x128xf32>
    %26 = math.exp %25 : vector<256x128xf32>
    %cst_6 = arith.constant 1.000000e+00 : f32
    %27 = vector.broadcast %cst_6 : f32 to vector<256x128xf32>
    %28 = arith.subf %26, %27 : vector<256x128xf32>
    %29 = arith.select %23, %21, %28 : vector<256x128xi1>, vector<256x128xf32>
    %30 = arith.truncf %29 : vector<256x128xf32> to vector<256x128xbf16>
    %c0_7 = arith.constant 0 : index
    %c0_8 = arith.constant 0 : index
    %31 = vector.load %arg4[%c0_7, %c0_8] : memref<128x128xbf16, #tpu.memory_space<vmem>>, vector<128x128xbf16>
    %cst_9 = arith.constant dense<0.000000e+00> : vector<256x128xf32>
    %32 = tpu.matmul %30, %31, %cst_9 {dimension_numbers = #tpu.dot_dimension_numbers<[1], [0], [0], [1], [0, 0, 1, 1], [], []>} : vector<256x128xbf16>, vector<128x128xbf16>, vector<256x128xf32> -> vector<256x128xf32>
    %c0_10 = arith.constant 0 : index
    %c0_11 = arith.constant 0 : index
    %33 = vector.load %arg5[%c0_10, %c0_11] : memref<1x128xf32, #tpu.memory_space<vmem>>, vector<1x128xf32>
    %34 = vector.broadcast %33 : vector<1x128xf32> to vector<256x128xf32>
    %35 = arith.addf %32, %34 : vector<256x128xf32>
    %cst_12 = arith.constant 0.000000e+00 : f32
    %36 = vector.broadcast %cst_12 : f32 to vector<256x128xf32>
    %37 = arith.cmpf ogt, %35, %36 : vector<256x128xf32>
    %cst_13 = arith.constant 0.000000e+00 : f32
    %38 = vector.broadcast %cst_13 : f32 to vector<256x128xf32>
    %39 = arith.minimumf %35, %38 : vector<256x128xf32>
    %40 = math.exp %39 : vector<256x128xf32>
    %cst_14 = arith.constant 1.000000e+00 : f32
    %41 = vector.broadcast %cst_14 : f32 to vector<256x128xf32>
    %42 = arith.subf %40, %41 : vector<256x128xf32>
    %43 = arith.select %37, %35, %42 : vector<256x128xi1>, vector<256x128xf32>
    %c0_15 = arith.constant 0 : index
    %c0_16 = arith.constant 0 : index
    %44 = vector.load %arg6[%c0_15, %c0_16] : memref<128x1xf32, #tpu.memory_space<vmem>>, vector<128x1xf32>
    %cst_17 = arith.constant dense<0.000000e+00> : vector<256x1xf32>
    %45 = tpu.matmul %43, %44, %cst_17 {dimension_numbers = #tpu.dot_dimension_numbers<[1], [0], [0], [1], [0, 0, 1, 1], [], []>} : vector<256x128xf32>, vector<128x1xf32>, vector<256x1xf32> -> vector<256x1xf32>
    %c0_18 = arith.constant 0 : index
    %46 = memref.load %arg7[%c0_18] : memref<1xf32, #tpu.memory_space<smem>>
    %47 = vector.broadcast %46 : f32 to vector<256x1xf32>
    %48 = arith.addf %45, %47 : vector<256x1xf32>
    %c0_19 = arith.constant 0 : index
    %c0_20 = arith.constant 0 : index
    %49 = vector.load %arg8[%c0_19, %c0_20] : memref<256x1xf32, #tpu.memory_space<vmem>>, vector<256x1xf32>
    tpu.vector_store %arg8[%c0_19, %c0_20], %48 {strides = array<i32>} : memref<256x1xf32, #tpu.memory_space<vmem>>, vector<256x1xf32>,
    return
  }
  func.func @transform_0(%arg0: i32) -> (i32, i32) {
    %c0_i32 = arith.constant 0 : i32
    %c0_i32_0 = arith.constant 0 : i32
    return %arg0, %c0_i32 : i32, i32
  }
  func.func @transform_1(%arg0: i32) -> (i32, i32) {
    %c0_i32 = arith.constant 0 : i32
    %c0_i32_0 = arith.constant 0 : i32
    %c0_i32_1 = arith.constant 0 : i32
    return %c0_i32, %c0_i32_0 : i32, i32
  }
  func.func @transform_2(%arg0: i32) -> (i32, i32) {
    %c0_i32 = arith.constant 0 : i32
    %c0_i32_0 = arith.constant 0 : i32
    %c0_i32_1 = arith.constant 0 : i32
    return %c0_i32, %c0_i32_0 : i32, i32
  }
  func.func @transform_3(%arg0: i32) -> (i32, i32) {
    %c0_i32 = arith.constant 0 : i32
    %c0_i32_0 = arith.constant 0 : i32
    %c0_i32_1 = arith.constant 0 : i32
    return %c0_i32, %c0_i32_0 : i32, i32
  }
  func.func @transform_4(%arg0: i32) -> (i32, i32) {
    %c0_i32 = arith.constant 0 : i32
    %c0_i32_0 = arith.constant 0 : i32
    %c0_i32_1 = arith.constant 0 : i32
    return %c0_i32, %c0_i32_0 : i32, i32
  }
  func.func @transform_5(%arg0: i32) -> (i32, i32) {
    %c0_i32 = arith.constant 0 : i32
    %c0_i32_0 = arith.constant 0 : i32
    %c0_i32_1 = arith.constant 0 : i32
    return %c0_i32, %c0_i32_0 : i32, i32
  }
  func.func @transform_6(%arg0: i32) -> i32 {
    %c0_i32 = arith.constant 0 : i32
    %c0_i32_0 = arith.constant 0 : i32
    return %c0_i32 : i32
  }
  func.func @transform_7(%arg0: i32) -> (i32, i32) {
    %c0_i32 = arith.constant 0 : i32
    %c0_i32_0 = arith.constant 0 : i32
    return %arg0, %c0_i32 : i32, i32
  }
}

</mosaic_0001>

<bundles_post_ra>
// kernel: tpu_custom_call.1
= control target key start
LH: loop header
LB: loop body
LE: loop exit
PB: predicated region body
PF: predicated region fallthrough
CT: control target
= control target key end

     0   :  { %v2075_v0 = vmov 1   ;;  %v2076_v1 = vmov 0   ;;  %v2077_v9 = vmov 2   ;;  %v222_v58 = vlaneseq  ;;  %s2929_s0 = inlined_call_operand.vmem [shape: f32[256,3], index: 0, kind: input, shape index: {}]   ;;  %s2930_s3 = inlined_call_operand.vmem [shape: bf16[128,128], index: 3, kind: input, shape index: {}]   ;;  %s2931_s1 = inlined_call_operand.vmem [shape: f32[3,128], index: 1, kind: input, shape index: {}]   ;;  %s2932_s2 = inlined_call_operand.vmem [shape: f32[1,128], index: 2, kind: input, shape index: {}]   ;;  %s2933_s5 = inlined_call_operand.vmem [shape: f32[128,1], index: 5, kind: input, shape index: {}]   ;;  %s2934_s4 = inlined_call_operand.vmem [shape: f32[1,128], index: 4, kind: input, shape index: {}]   ;;  %s2935_s6 = inlined_call_operand.<no memory space> [shape: f32[1], index: 6, kind: input, shape index: {}]   ;;  %s2936_s7 = inlined_call_operand.vmem [shape: f32[256,1], index: 7, kind: output, shape index: {}]  }
   0x1   :  { %1910 = vset.pattern.permute.xlu0 %v2075_v0  ;;  %1909 = vset.pattern.permute.xlu1 %v2076_v1  ;;  %v30_v2 = vld [vmem:[%s2929_s0 + $0x10] sm:$0xff]  ;;  %v28_v3 = vld [vmem:[%s2929_s0] sm:$0xff]  ;;  %v31_v4 = vld [vmem:[%s2929_s0 + $0x18] sm:$0xff] }
   0x2   :  { %74 = vperm.xlu1 %1909, %v30_v2   ;;  %297 = vperm.xlu0 %1910, %v28_v3   ;;  %v33_v5 = vld [vmem:[%s2929_s0 + $0x28] sm:$0xff]  ;;  %v2139_v7 = vld [vmem:[%s2929_s0 + $0x40] sm:$0xff]  ;;  %v2145_v8 = vld [vmem:[%s2929_s0 + $0x58] sm:$0xff]  ;;  %v223_v62 = vshrl.u32 %v222_v58, 7 }
   0x3   :  { %v29_v6 = vld [vmem:[%s2929_s0 + $0x8] sm:$0xff]  ;;  %v32_v10 = vld [vmem:[%s2929_s0 + $0x20] sm:$0xff]  ;;  %v35_v11 = vld [vmem:[%s2929_s0 + $0x38] sm:$0xff] }
   0x4   :  { %v37_v12 = vld [vmem:[%s2929_s0 + $0x48] sm:$0xff]  ;;  %v34_v13 = vld [vmem:[%s2929_s0 + $0x30] sm:$0xff]  ;;  %v2166_v14 = vld [vmem:[%s2929_s0 + $0x60] sm:$0xff] }
   0x5   :  { %v2172_v15 = vld [vmem:[%s2929_s0 + $0x78] sm:$0xff]  ;;  %v2179_v16 = vld [vmem:[%s2929_s0 + $0x88] sm:$0xff]  ;;  %v2185_v17 = vld [vmem:[%s2929_s0 + $0xa0] sm:$0xff] }
   0x6   :  { %79 = vperm.xlu1 %1909, %v31_v4   ;;  %309 = vperm.xlu0 %1910, %v31_v4   ;;  %v2191_v18 = vld [vmem:[%s2929_s0 + $0xb8] sm:$0xff]  ;;  %v2198_v19 = vld [vmem:[%s2929_s0 + $0xc8] sm:$0xff]  ;;  %v38_v20 = vld [vmem:[%s2929_s0 + $0x50] sm:$0xff] }
   0x7   :  { %v1938_v21 = vld [vmem:[%s2930_s3] sm:$0xff]   ;;  %v1939_v22 = vld [vmem:[%s2930_s3 + $0x8] sm:$0xff]   ;;  %v1940_v23 = vld [vmem:[%s2930_s3 + $0x10] sm:$0xff]  }
   0x8   :  { %1746 = vmatprep.subr.bf16.mxu0 %v1938_v21  ;;  %v1941_v24 = vld [vmem:[%s2930_s3 + $0x18] sm:$0xff]   ;;  %v1942_v25 = vld [vmem:[%s2930_s3 + $0x20] sm:$0xff]   ;;  %v1943_v26 = vld [vmem:[%s2930_s3 + $0x28] sm:$0xff]  }
   0x9   :  { %1747 = vmatpush3.bf16.msra.mxu0 %v1938_v21  ;;  %v1944_v27 = vld [vmem:[%s2930_s3 + $0x30] sm:$0xff]   ;;  %v1945_v28 = vld [vmem:[%s2930_s3 + $0x38] sm:$0xff]   ;;  %v41_v29 = vld [vmem:[%s2929_s0 + $0x68] sm:$0xff] }
   0xa   :  { %1911 = vset.pattern.permute.xlu1 %v2075_v0  ;;  %317 = vperm.xlu0 %1910, %v33_v5   ;;  %v42_v30 = vld [vmem:[%s2929_s0 + $0x70] sm:$0xff]  ;;  %v2252_v31 = vld [vmem:[%s2929_s0 + $0xe0] sm:$0xff]  ;;  %v2260_v32 = vld [vmem:[%s2929_s0 + $0xf8] sm:$0xff] }
   0xb   :  { %301 = vperm.xlu1 %1911, %v29_v6   ;;  %1748 = vmatprep.subr.bf16.mxu0 %v1939_v22  ;;  %v44_v33 = vld [vmem:[%s2929_s0 + $0x80] sm:$0xff]  ;;  %v47_v34 = vld [vmem:[%s2929_s0 + $0x98] sm:$0xff]  ;;  %v2275_v35 = vld [vmem:[%s2929_s0 + $0xa8] sm:$0xff] }
   0xc   :  { %v46_v38 = vld [vmem:[%s2929_s0 + $0x90] sm:$0xff]  ;;  %v2289_v39 = vld [vmem:[%s2929_s0 + $0xc0] sm:$0xff]  ;;  %v2295_v42 = vld [vmem:[%s2929_s0 + $0xd8] sm:$0xff] }
   0xd   :  { %1749 = vmatpush3.bf16.msra.mxu0 %v1939_v22  ;;  %v2305_v45 = vld [vmem:[%s2929_s0 + $0xe8] sm:$0xff]  ;;  %v50_v60 = vld [vmem:[%s2929_s0 + $0xb0] sm:$0xff] }
   0xe   :  { %329 = vperm.xlu0 %1910, %v2139_v7   ;;  %1750 = vmatprep.subr.bf16.mxu0 %v1940_v23 }
   0xf   :  { %305 = vperm.xlu1 %1911, %v30_v2  }
  0x11   :  { %1751 = vmatpush3.bf16.msra.mxu0 %v1940_v23 }
  0x12   :  { %341 = vperm.xlu0 %1910, %v2145_v8   ;;  %1752 = vmatprep.subr.bf16.mxu0 %v1941_v24 }
  0x13   :  { %1912 = vset.pattern.permute.xlu1 %v2077_v9 }
  0x14   :  { %493 = vperm.xlu1 %1912, %v28_v3  }
  0x15   :  { %1753 = vmatpush3.bf16.msra.mxu0 %v1941_v24 }
  0x16   :  { %1918 = vset.pattern.permute.xlu0 %v2077_v9  ;;  %1754 = vmatprep.subr.bf16.mxu0 %v1942_v25 }
  0x17   :  { %497 = vperm.xlu0 %1918, %v29_v6  }
  0x18   :  { %501 = vperm.xlu1 %1912, %v30_v2  }
  0x19   :  { %1755 = vmatpush3.bf16.msra.mxu0 %v1942_v25 }
  0x1a   :  { %1756 = vmatprep.subr.bf16.mxu0 %v1943_v26 }
  0x1b   :  { %509 = vperm.xlu0 %1918, %v32_v10  }
  0x1c   :  { %505 = vperm.xlu1 %1912, %v31_v4  }
  0x1d   :  { %1757 = vmatpush3.bf16.msra.mxu0 %v1943_v26 }
  0x1e   :  { %1758 = vmatprep.subr.bf16.mxu0 %v1944_v27 }
  0x1f   :  { %521 = vperm.xlu0 %1918, %v35_v11  }
  0x20   :  { %1913 = vset.pattern.permute.xlu1 %v2076_v1 }
  0x21   :  { %89 = vperm.xlu1 %1913, %v33_v5   ;;  %1759 = vmatpush3.bf16.msra.mxu0 %v1944_v27 }
  0x22   :  { %1760 = vmatprep.subr.bf16.mxu0 %v1945_v28 }
  0x23   :  { %529 = vperm.xlu0 %1918, %v37_v12  }
  0x25   :  { %94 = vperm.xlu1 %1913, %v34_v13   ;;  %1761 = vmatpush3.bf16.msra.mxu0 %v1945_v28 }
  0x27   :  { %541 = vperm.xlu0 %1918, %v2166_v14  }
  0x29   :  { %1914 = vset.pattern.permute.xlu1 %v2075_v0 }
  0x2a   :  { %313 = vperm.xlu1 %1914, %v32_v10  }
  0x2b   :  { %553 = vperm.xlu0 %1918, %v2172_v15  }
  0x2e   :  { %321 = vperm.xlu1 %1914, %v34_v13  }
  0x2f   :  { %561 = vperm.xlu0 %1918, %v2179_v16  }
  0x32   :  { %325 = vperm.xlu1 %1914, %v35_v11  }
  0x33   :  { %573 = vperm.xlu0 %1918, %v2185_v17  }
  0x36   :  { %1915 = vset.pattern.permute.xlu1 %v2077_v9 }
  0x37   :  { %513 = vperm.xlu1 %1915, %v33_v5   ;;  %585 = vperm.xlu0 %1918, %v2191_v18   ;;  %v60_v5 = vld [vmem:[%s2931_s1] sm:$0x7] }
  0x3b   :  { %517 = vperm.xlu1 %1915, %v34_v13   ;;  %593 = vperm.xlu0 %1918, %v2198_v19   ;;  %v622_v13 = vsub.s32 2, %v223_v62 }
  0x3d   :  { %v2365_v21 = vrot.slane %v60_v5, %v622_v13 }
  0x3f   :  { %1916 = vset.pattern.permute.xlu1 %v2076_v1  ;;  %1932 = vset.pattern.permute.xlu0 %v2076_v1 }
  0x40   :  { %104 = vperm.xlu1 %1916, %v2139_v7   ;;  %64 = vperm.xlu0 %1932, %v28_v3   ;;  %v224_v3 = vsub.s32 0, %v223_v62 }
  0x44   :  { %114 = vperm.xlu1 %1916, %v38_v20   ;;  %69 = vperm.xlu0 %1932, %v29_v6   ;;  %v426_v6 = vsub.s32 1, %v223_v62 }
  0x48   :  { %119 = vperm.xlu1 %1916, %v2145_v8   ;;  %84 = vperm.xlu0 %1932, %v32_v10  }
  0x4c   :  { %1917 = vset.pattern.permute.xlu1 %v2075_v0  ;;  %99 = vperm.xlu0 %1932, %v35_v11   ;;  %v2352_v11 = vrot.slane %v60_v5, %v426_v6 }
  0x4d   :  { %333 = vperm.xlu1 %1917, %v37_v12  }
  0x50   :  { %109 = vperm.xlu0 %1932, %v37_v12  }
  0x51   :  { %337 = vperm.xlu1 %1917, %v38_v20  }
  0x54   :  { %124 = vperm.xlu0 %1932, %v2166_v14  }
  0x55   :  { %1919 = vset.pattern.permute.xlu1 %v2077_v9 }
  0x56   :  { %525 = vperm.xlu1 %1919, %v2139_v7  }
  0x58   :  { %139 = vperm.xlu0 %1932, %v2172_v15  }
  0x5a   :  { %533 = vperm.xlu1 %1919, %v38_v20  }
  0x5c   :  { %149 = vperm.xlu0 %1932, %v2179_v16  }
  0x5e   :  { %537 = vperm.xlu1 %1919, %v2145_v8   ;;  %v2348_v8 = vrot.slane %v60_v5, %v224_v3 }
  0x60   :  { %164 = vperm.xlu0 %1932, %v2185_v17  }
  0x62   :  { %1920 = vset.pattern.permute.xlu1 %v2076_v1 }
  0x63   :  { %129 = vperm.xlu1 %1920, %v41_v29  }
  0x64   :  { %179 = vperm.xlu0 %1932, %v2191_v18  }
  0x67   :  { %134 = vperm.xlu1 %1920, %v42_v30  }
  0x68   :  { %189 = vperm.xlu0 %1932, %v2198_v19  }
  0x6b   :  { %1921 = vset.pattern.permute.xlu1 %v2075_v0 }
  0x6c   :  { %345 = vperm.xlu1 %1921, %v2166_v14   ;;  %204 = vperm.xlu0 %1932, %v2252_v31  }
  0x70   :  { %353 = vperm.xlu1 %1921, %v42_v30   ;;  %219 = vperm.xlu0 %1932, %v2260_v32  }
  0x74   :  { %357 = vperm.xlu1 %1921, %v2172_v15   ;;  %1934 = vset.pattern.permute.xlu0 %v2075_v0 }
  0x75   :  { %349 = vperm.xlu0 %1934, %v41_v29  }
  0x78   :  { %1922 = vset.pattern.permute.xlu1 %v2077_v9 }
  0x79   :  { %545 = vperm.xlu1 %1922, %v41_v29   ;;  %361 = vperm.xlu0 %1934, %v44_v33  }
  0x7d   :  { %549 = vperm.xlu1 %1922, %v42_v30   ;;  %373 = vperm.xlu0 %1934, %v47_v34  }
  0x81   :  { %v2277_v36 = vpop.permute.xlu1 %74  ;;  %1923 = vset.pattern.permute.xlu1 %v2076_v1  ;;  %v2280_v37 = vpop.permute.xlu0 %297  ;;  %381 = vperm.xlu0 %1934, %v2275_v35  }
  0x82   :  { %144 = vperm.xlu1 %1923, %v44_v33   ;;  %v228_v22 = vmul.f32 %v2348_v8, %v2277_v36 }
  0x85   :  { %v80_v40 = vpop.permute.xlu1 %79  ;;  %v310_v41 = vpop.permute.xlu0 %309  ;;  %393 = vperm.xlu0 %1934, %v2289_v39  }
  0x86   :  { %154 = vperm.xlu1 %1923, %v46_v38   ;;  %v229_v12 = vmul.f32 %v2348_v8, %v80_v40  ;;  %v431_v20 = vmul.f32 %v2352_v11, %v310_v41 }
  0x89   :  { %v2297_v43 = vpop.permute.xlu0 %317  ;;  %405 = vperm.xlu0 %1934, %v2295_v42  }
  0x8a   :  { %v2300_v44 = vpop.permute.xlu1 %301  ;;  %159 = vperm.xlu1 %1923, %v47_v34   ;;  %v433_v30 = vmul.f32 %v2352_v11, %v2297_v43 }
  0x8b   :  { %v429_v13 = vmul.f32 %v2352_v11, %v2300_v44 }
  0x8d   :  { %v2307_v46 = vpop.permute.xlu0 %329  ;;  %413 = vperm.xlu0 %1934, %v2305_v45  }
  0x8e   :  { %v306_v47 = vpop.permute.xlu1 %305  ;;  %1924 = vset.pattern.permute.xlu1 %v2075_v0 }
  0x8f   :  { %365 = vperm.xlu1 %1924, %v2179_v16   ;;  %v2361_v16 = vld [vmem:[%s2932_s2] ss:$0 sm:$0xff]  ;;  %v430_v26 = vmul.f32 %v2352_v11, %v306_v47 }
  0x90   :  { %v266_v28 = vadd.f32 %v2361_v16, %v228_v22 }
  0x91   :  { %v2312_v48 = vpop.permute.xlu0 %341  ;;  %1936 = vset.pattern.permute.xlu0 %v2077_v9 }
  0x92   :  { %605 = vperm.xlu0 %1936, %v2252_v31   ;;  %v462_v36 = vadd.f32 %v430_v26, %v266_v28 }
  0x93   :  { %369 = vperm.xlu1 %1924, %v46_v38   ;;  %v2316_v49 = vpop.permute.xlu1 %493 }
  0x94   :  { %v624_v5 = vmul.f32 %v2365_v21, %v2316_v49 }
  0x96   :  { %v2318_v50 = vpop.permute.xlu0 %497  ;;  %617 = vperm.xlu0 %1936, %v2260_v32  }
  0x97   :  { %1925 = vset.pattern.permute.xlu1 %v2077_v9  ;;  %v502_v51 = vpop.permute.xlu1 %501  ;;  %v625_v49 = vmul.f32 %v2365_v21, %v2318_v50 }
  0x98   :  { %557 = vperm.xlu1 %1925, %v44_v33   ;;  %v626_v29 = vmul.f32 %v2365_v21, %v502_v51 }
  0x9a   :  { %v2322_v52 = vpop.permute.xlu0 %509 }
  0x9b   :  { %v506_v53 = vpop.permute.xlu1 %505  ;;  %v628_v50 = vmul.f32 %v2365_v21, %v2322_v52 }
  0x9c   :  { %565 = vperm.xlu1 %1925, %v46_v38   ;;  %v627_v23 = vmul.f32 %v2365_v21, %v506_v53  ;;  %v2388_v53 = vadd.f32 %v626_v29, %v462_v36 }
  0x9e   :  { %v2324_v54 = vpop.permute.xlu0 %521  ;;  %vm690_vm0 = vcmp.gt.f32.partialorder %v2388_v53, 0.0 }
  0xa0   :  { %569 = vperm.xlu1 %1925, %v47_v34   ;;  %v90_v55 = vpop.permute.xlu1 %89 }
  0xa2   :  { %v2326_v56 = vpop.permute.xlu0 %529 }
  0xa4   :  { %1926 = vset.pattern.permute.xlu1 %v2076_v1  ;;  %v95_v57 = vpop.permute.xlu1 %94 }
  0xa5   :  { %169 = vperm.xlu1 %1926, %v2275_v35   ;;  %v232_v38 = vmul.f32 %v2348_v8, %v95_v57 }
  0xa6   :  { %v2330_v59 = vpop.permute.xlu0 %541 }
  0xa7   :  { %v270_v57 = vadd.f32 %v2361_v16, %v232_v38 }
  0xa9   :  { %174 = vperm.xlu1 %1926, %v50_v60   ;;  %v2335_v61 = vpop.permute.xlu1 %313 }
  0xaa   :  { %v2337_v63 = vpop.permute.xlu0 %553  ;;  %v432_v36 = vmul.f32 %v2352_v11, %v2335_v61 }
  0xad   :  { %1927 = vset.pattern.permute.xlu1 %v2075_v0  ;;  %v322_v2 = vpop.permute.xlu1 %321 }
  0xae   :  { %377 = vperm.xlu1 %1927, %v2185_v17   ;;  %v2341_v4 = vpop.permute.xlu0 %561  ;;  %v267_v17 = vadd.f32 %v2361_v16, %v229_v12  ;;  %v434_v43 = vmul.f32 %v2352_v11, %v322_v2 }
  0xb0   :  { %v463_v27 = vadd.f32 %v431_v20, %v267_v17  ;;  %v466_v17 = vadd.f32 %v434_v43, %v270_v57  ;;  %v2410_v20 = vld [vmem:[%s2929_s0 + $0xd0] sm:$0xff] }
  0xb1   :  { %v2346_v7 = vpop.permute.xlu1 %325 }
  0xb2   :  { %385 = vperm.xlu1 %1927, %v50_v60   ;;  %v2350_v10 = vpop.permute.xlu0 %573  ;;  %v2380_v33 = vadd.f32 %v627_v23, %v463_v27 }
  0xb4   :  { %vm691_vm1 = vcmp.gt.f32.partialorder %v2380_v33, 0.0 }
  0xb6   :  { %389 = vperm.xlu1 %1927, %v2191_v18   ;;  %v514_v14 = vpop.permute.xlu1 %513  ;;  %v2356_v15 = vpop.permute.xlu0 %585  ;;  %v231_v18 = vmul.f32 %v2348_v8, %v90_v55  ;;  %v723_v55 = vmin.f32 %v2380_v33, 0.0 }
  0xb7   :  { %v629_v47 = vmul.f32 %v2365_v21, %v514_v14  ;;  %v722_v14 = vmin.f32 %v2388_v53, 0.0 }
  0xb8   :  { %v269_v34 = vadd.f32 %v2361_v16, %v231_v18  ;;  %v758_v22 = vmul.f32 1.442695, %v723_v55 }
  0xba   :  { %1928 = vset.pattern.permute.xlu1 %v2077_v9  ;;  %v518_v24 = vpop.permute.xlu1 %517  ;;  %v2372_v25 = vpop.permute.xlu0 %593  ;;  %v465_v58 = vadd.f32 %v433_v30, %v269_v34  ;;  %v756_v30 = vmul.f32 1.442695, %v722_v14  ;;  %1946 = vpow2.f32 %v758_v22 }
  0xbb   :  { %577 = vperm.xlu1 %1928, %v2275_v35   ;;  %v428_v35 = vmul.f32 %v2352_v11, %v2280_v37 }
  0xbc   :  { %v2400_v6 = vadd.f32 %v629_v47, %v465_v58 }
  0xbe   :  { %v725_v27 = vmin.f32 %v2400_v6, 0.0  ;;  %vm693_vm4 = vcmp.gt.f32.partialorder %v2400_v6, 0.0 }
  0xbf   :  { %581 = vperm.xlu1 %1928, %v50_v60   ;;  %v105_v40 = vpop.permute.xlu1 %104  ;;  %v65_v41 = vpop.permute.xlu0 %64  ;;  %v630_v60 = vmul.f32 %v2365_v21, %v518_v24 }
  0xc0   :  { %v226_v51 = vmul.f32 %v2348_v8, %v65_v41  ;;  %v762_v43 = vmul.f32 1.442695, %v725_v27  ;;  %v234_v61 = vmul.f32 %v2348_v8, %v105_v40 }
  0xc1   :  { %v2417_v24 = vadd.f32 %v630_v60, %v466_v17  ;;  %v435_v60 = vmul.f32 %v2352_v11, %v2346_v7  ;;  %v633_v7 = vmul.f32 %v2365_v21, %v2326_v56 }
  0xc2   :  { %v264_v62 = vadd.f32 %v2361_v16, %v226_v51  ;;  %v272_v22 = vadd.f32 %v2361_v16, %v234_v61 }
  0xc3   :  { %1929 = vset.pattern.permute.xlu1 %v2076_v1  ;;  %v2396_v37 = vpop.permute.xlu1 %114  ;;  %v70_v3 = vpop.permute.xlu0 %69  ;;  %vm694_vm6 = vcmp.gt.f32.partialorder %v2417_v24, 0.0 }
  0xc4   :  { %v460_v2 = vadd.f32 %v428_v35, %v264_v62  ;;  %v227_v12 = vmul.f32 %v2348_v8, %v70_v3  ;;  %184 = vperm.xlu1 %1929, %v2289_v39   ;;  %v726_v35 = vmin.f32 %v2417_v24, 0.0  ;;  %v631_v62 = vmul.f32 %v2365_v21, %v2324_v54 }
  0xc6   :  { %v265_v23 = vadd.f32 %v2361_v16, %v227_v12  ;;  %v2415_v18 = vadd.f32 %v624_v5, %v460_v2  ;;  %v764_v2 = vmul.f32 1.442695, %v726_v35 }
  0xc7   :  { %v120_v26 = vpop.permute.xlu1 %119  ;;  %v85_v44 = vpop.permute.xlu0 %84 }
  0xc8   :  { %v461_v28 = vadd.f32 %v429_v13, %v265_v23  ;;  %v230_v29 = vmul.f32 %v2348_v8, %v85_v44  ;;  %194 = vperm.xlu1 %1929, %v2410_v20   ;;  %v720_v34 = vmin.f32 %v2415_v18, 0.0  ;;  %vm688_vm2 = vcmp.gt.f32.partialorder %v2415_v18, 0.0 }
  0xca   :  { %v268_v38 = vadd.f32 %v2361_v16, %v230_v29  ;;  %v2428_v41 = vadd.f32 %v625_v49, %v461_v28  ;;  %v752_v51 = vmul.f32 1.442695, %v720_v34  ;;  %v436_v49 = vmul.f32 %v2352_v11, %v2307_v46 }
  0xcb   :  { %v100_v47 = vpop.permute.xlu0 %99 }
  0xcc   :  { %v464_v55 = vadd.f32 %v432_v36, %v268_v38  ;;  %v233_v58 = vmul.f32 %v2348_v8, %v100_v47  ;;  %199 = vperm.xlu1 %1929, %v2295_v42   ;;  %v334_v52 = vpop.permute.xlu1 %333  ;;  %v721_v57 = vmin.f32 %v2428_v41, 0.0  ;;  %1948 = vpow2.f32 %v752_v51 }
  0xcd   :  { %1950 = vpow2.f32 %v756_v30  ;;  %v437_v27 = vmul.f32 %v2352_v11, %v334_v52  ;;  %v1947_v30 = vpop.eup %1946  ;;  %v468_v35 = vadd.f32 %v436_v49, %v272_v22  ;;  %vm689_vm3 = vcmp.gt.f32.partialorder %v2428_v41, 0.0 }
  0xce   :  { %v2439_v3 = vadd.f32 %v628_v50, %v464_v55  ;;  %v271_v5 = vadd.f32 %v2361_v16, %v233_v58  ;;  %v754_v13 = vmul.f32 1.442695, %v721_v57  ;;  %1952 = vpow2.f32 %v762_v43 }
  0xcf   :  { %v110_v12 = vpop.permute.xlu0 %109  ;;  %v236_v50 = vmul.f32 %v2348_v8, %v2396_v37  ;;  %v1604_v58 = vadd.f32 -1.0, %v1947_v30 }
  0xd0   :  { %v724_v14 = vmin.f32 %v2439_v3, 0.0  ;;  %v467_v54 = vadd.f32 %v435_v60, %v271_v5  ;;  %v235_v40 = vmul.f32 %v2348_v8, %v110_v12  ;;  %1930 = vset.pattern.permute.xlu1 %v2075_v0  ;;  %v338_v17 = vpop.permute.xlu1 %337  ;;  %1954 = vpow2.f32 %v754_v13 }
  0xd1   :  { %397 = vperm.xlu1 %1930, %v2198_v19   ;;  %1956 = vpow2.f32 %v764_v2  ;;  %v237_v19 = vmul.f32 %v2348_v8, %v120_v26  ;;  %v438_v43 = vmul.f32 %v2352_v11, %v338_v17  ;;  %v274_v61 = vadd.f32 %v2361_v16, %v236_v50 }
  0xd2   :  { %v760_v23 = vmul.f32 1.442695, %v724_v14  ;;  %v2451_v44 = vadd.f32 %v631_v62, %v467_v54  ;;  %v273_v28 = vadd.f32 %v2361_v16, %v235_v40  ;;  %v439_v62 = vmul.f32 %v2352_v11, %v2312_v48 }
  0xd3   :  { %v2455_v29 = vpop.permute.xlu0 %124  ;;  %v275_v57 = vadd.f32 %v2361_v16, %v237_v19  ;;  %v470_v48 = vadd.f32 %v438_v43, %v274_v61  ;;  %v851_v49 = vsel %vm691_vm1, %v2380_v33, %v1604_v58  ;;  %vm692_vm5 = vcmp.gt.f32.partialorder %v2439_v3, 0.0 }
  0xd4   :  { %1958 = vpow2.f32 %v760_v23  ;;  %v727_v46 = vmin.f32 %v2451_v44, 0.0  ;;  %v469_v56 = vadd.f32 %v437_v27, %v273_v28  ;;  %vm695_vm7 = vcmp.gt.f32.partialorder %v2451_v44, 0.0 }
  0xd5   :  { %401 = vperm.xlu1 %1930, %v2410_v20   ;;  %v526_v34 = vpop.permute.xlu1 %525  ;;  %v471_v28 = vadd.f32 %v439_v62, %v275_v57 }
  0xd6   :  { %v766_v36 = vmul.f32 1.442695, %v727_v46  ;;  %v2462_v38 = vadd.f32 %v633_v7, %v469_v56  ;;  %v632_v47 = vmul.f32 %v2365_v21, %v526_v34  ;;  %v1949_v51 = vpop.eup %1948 }
  0xd7   :  { %v2466_v55 = vpop.permute.xlu0 %139  ;;  %v1951_v52 = vpop.eup %1950  ;;  %v1601_v13 = vadd.f32 -1.0, %v1949_v51 }
  0xd8   :  { %1960 = vpow2.f32 %v766_v36  ;;  %v729_v37 = vmin.f32 %v2462_v38, 0.0  ;;  %v2469_v26 = vadd.f32 %v632_v47, %v468_v35  ;;  %v1953_v5 = vpop.eup %1952  ;;  %v1603_v17 = vadd.f32 -1.0, %v1951_v52 }
  0xd9   :  { %1931 = vset.pattern.permute.xlu1 %v2077_v9  ;;  %v534_v60 = vpop.permute.xlu1 %533  ;;  %v1606_v30 = vadd.f32 -1.0, %v1953_v5  ;;  %v848_v33 = vsel %vm688_vm2, %v2415_v18, %v1601_v13  ;;  %vm697_vm9 = vcmp.gt.f32.partialorder %v2462_v38, 0.0 }
  0xda   :  { %v770_v2 = vmul.f32 1.442695, %v729_v37  ;;  %v728_v12 = vmin.f32 %v2469_v26, 0.0  ;;  %589 = vperm.xlu1 %1931, %v2289_v39   ;;  %v1955_v14 = vpop.eup %1954  ;;  %v634_v54 = vmul.f32 %v2365_v21, %v534_v60  ;;  %v850_v35 = vsel %vm690_vm0, %v2388_v53, %v1603_v17 }
  0xdb   :  { %v2481_v40 = vpop.permute.xlu0 %149  ;;  %v1602_v22 = vadd.f32 -1.0, %v1955_v14  ;;  %v1957_v23 = vpop.eup %1956  ;;  %v881_v43 = vpack.c.bf16 %v851_v49, %v850_v35  ;;  %vm696_vm8 = vcmp.gt.f32.partialorder %v2469_v26, 0.0  ;;  %v639_v35 = vmul.f32 %v2365_v21, %v2337_v63 }
  0xdc   :  { %1962 = vpow2.f32 %v770_v2  ;;  %v768_v7 = vmul.f32 1.442695, %v728_v12  ;;  %v2485_v27 = vadd.f32 %v634_v54, %v470_v48  ;;  %v1607_v58 = vadd.f32 -1.0, %v1957_v23 }
  0xdd   :  { %v538_v39 = vpop.permute.xlu1 %537  ;;  %v849_v50 = vsel %vm689_vm3, %v2428_v41, %v1602_v22  ;;  %v853_v41 = vsel %vm693_vm4, %v2400_v6, %v1606_v30 }
  0xde   :  { %v1959_v46 = vpop.eup %1958  ;;  %1964 = vpow2.f32 %v768_v7  ;;  %v635_v56 = vmul.f32 %v2365_v21, %v538_v39  ;;  %597 = vperm.xlu1 %1931, %v2410_v20   ;;  %v730_v19 = vmin.f32 %v2485_v27, 0.0  ;;  %v880_v34 = vpack.c.bf16 %v849_v50, %v848_v33 }
  0xdf   :  { %v2493_v36 = vpop.permute.xlu0 %164  ;;  %v1605_v47 = vadd.f32 -1.0, %v1959_v46  ;;  %v854_v6 = vsel %vm694_vm6, %v2417_v24, %v1607_v58  ;;  %v2521_v24 = vld [vmem:[%s2929_s0 + $0xf0] sm:$0xff]  ;;  %v636_v39 = vmul.f32 %v2365_v21, %v2330_v59  ;;  %vm698_vm10 = vcmp.gt.f32.partialorder %v2485_v27, 0.0 }
  0xe0   :  { %v2499_v51 = vadd.f32 %v635_v56, %v471_v28  ;;  %v772_v20 = vmul.f32 1.442695, %v730_v19  ;;  %1762 = vmatprep.mubr.bf16.mxu0 %v880_v34  ;;  %v241_v28 = vmul.f32 %v2348_v8, %v2466_v55 }
  0xe1   :  { %v852_v18 = vsel %vm692_vm5, %v2439_v3, %v1605_v47  ;;  %1763 = vmatmul.mubr.bf16.vlgmr.msra.gmra.mrb[0].mxu0 %v881_v43 }
  0xe2   :  { %v1961_v52 = vpop.eup %1960  ;;  %v731_v37 = vmin.f32 %v2499_v51, 0.0  ;;  %601 = vperm.xlu1 %1931, %v2295_v42   ;;  %v130_v53 = vpop.permute.xlu1 %129  ;;  %v882_v62 = vpack.c.bf16 %v853_v41, %v852_v18  ;;  %1966 = vpow2.f32 %v772_v20  ;;  %v238_v42 = vmul.f32 %v2348_v8, %v2455_v29 }
  0xe3   :  { %v2506_v61 = vpop.permute.xlu0 %179  ;;  %v1608_v57 = vadd.f32 -1.0, %v1961_v52  ;;  %v279_v19 = vadd.f32 %v2361_v16, %v241_v28  ;;  %vm699_vm11 = vcmp.gt.f32.partialorder %v2499_v51, 0.0  ;;  %v239_v59 = vmul.f32 %v2348_v8, %v130_v53 }
  0xe4   :  { %v774_v60 = vmul.f32 1.442695, %v731_v37  ;;  %1766 = vmatprep.mubr.bf16.mxu0 %v882_v62  ;;  %v276_v54 = vadd.f32 %v2361_v16, %v238_v42 }
  0xe5   :  { %v855_v3 = vsel %vm695_vm7, %v2451_v44, %v1608_v57  ;;  %v277_v58 = vadd.f32 %v2361_v16, %v239_v59  ;;  %v641_v59 = vmul.f32 %v2365_v21, %v2341_v4 }
  0xe6   :  { %v1963_v5 = vpop.eup %1962  ;;  %1968 = vpow2.f32 %v774_v60  ;;  %1933 = vset.pattern.permute.xlu1 %v2076_v1  ;;  %v135_v2 = vpop.permute.xlu1 %134  ;;  %v883_v12 = vpack.c.bf16 %v855_v3, %v854_v6 }
  0xe7   :  { %209 = vperm.xlu1 %1933, %v2305_v45   ;;  %v2516_v13 = vpop.permute.xlu0 %189  ;;  %v1610_v14 = vadd.f32 -1.0, %v1963_v5 }
  0xe8   :  { %v1965_v48 = vpop.eup %1964 }
  0xe9   :  { %v1609_v44 = vadd.f32 -1.0, %v1965_v48  ;;  %1767 = vmatmul.mubr.bf16.gmra.mrb[4].mxu0 %v883_v12  ;;  %v857_v49 = vsel %vm697_vm9, %v2462_v38, %v1610_v14 }
  0xeb   :  { %214 = vperm.xlu1 %1933, %v2521_v24   ;;  %v346_v1 = vpop.permute.xlu1 %345  ;;  %v2527_v29 = vpop.permute.xlu0 %204  ;;  %v856_v17 = vsel %vm696_vm8, %v2469_v26, %v1609_v44 }
  0xec   :  { %v440_v7 = vmul.f32 %v2352_v11, %v346_v1  ;;  %v884_v22 = vpack.c.bf16 %v857_v49, %v856_v17  ;;  %v1967_v23 = vpop.eup %1966  ;;  %v243_v17 = vmul.f32 %v2348_v8, %v2481_v40 }
  0xed   :  { %v1611_v26 = vadd.f32 -1.0, %v1967_v23 }
  0xee   :  { %v472_v30 = vadd.f32 %v440_v7, %v276_v54  ;;  %1770 = vmatprep.mubr.bf16.mxu0 %v884_v22 }
  0xef   :  { %1935 = vset.pattern.permute.xlu1 %v2075_v0  ;;  %v354_v46 = vpop.permute.xlu1 %353  ;;  %v2537_v56 = vpop.permute.xlu0 %219  ;;  %v858_v0 = vsel %vm698_vm10, %v2485_v27, %v1611_v26  ;;  %v240_v27 = vmul.f32 %v2348_v8, %v135_v2 }
  0xf0   :  { %v1969_v33 = vpop.eup %1968  ;;  %409 = vperm.xlu1 %1935, %v2252_v31   ;;  %v668_v38 = vadd.f32 %v636_v39, %v472_v30  ;;  %v442_v37 = vmul.f32 %v2352_v11, %v354_v46  ;;  %v281_v39 = vadd.f32 %v2361_v16, %v243_v17 }
  0xf1   :  { %v1612_v50 = vadd.f32 -1.0, %v1969_v33  ;;  %v278_v60 = vadd.f32 %v2361_v16, %v240_v27 }
  0xf2   :  { %v732_v20 = vmin.f32 %v668_v38, 0.0  ;;  %vm700_vm13 = vcmp.gt.f32.partialorder %v668_v38, 0.0 }
  0xf3   :  { %v358_v55 = vpop.permute.xlu1 %357  ;;  %v859_v34 = vsel %vm699_vm11, %v2499_v51, %v1612_v50  ;;  %v474_v42 = vadd.f32 %v442_v37, %v278_v60  ;;  %v1321_v60 = vld [vmem:[%s2933_s5 + $0x8] sm:$0xff] }
  0xf4   :  { %v443_v31 = vmul.f32 %v2352_v11, %v358_v55  ;;  %417 = vperm.xlu1 %1935, %v2521_v24   ;;  %v350_v47 = vpop.permute.xlu0 %349  ;;  %v885_v43 = vpack.c.bf16 %v859_v34, %v858_v0  ;;  %v776_v63 = vmul.f32 1.442695, %v732_v20 }
  0xf5   :  { %v441_v18 = vmul.f32 %v2352_v11, %v350_v47 }
  0xf6   :  { %v475_v41 = vadd.f32 %v443_v31, %v279_v19  ;;  %1771 = vmatmul.mubr.bf16.gmra.mrb[8].mxu0 %v885_v43  ;;  %1970 = vpow2.f32 %v776_v63 }
  0xf7   :  { %v473_v53 = vadd.f32 %v441_v18, %v277_v58 }
  0xf8   :  { %v671_v52 = vadd.f32 %v639_v35, %v475_v41  ;;  %421 = vperm.xlu1 %1935, %v2260_v32   ;;  %v546_v51 = vpop.permute.xlu1 %545  ;;  %v362_v55 = vpop.permute.xlu0 %361 }
  0xf9   :  { %v637_v62 = vmul.f32 %v2365_v21, %v546_v51  ;;  %v444_v20 = vmul.f32 %v2352_v11, %v362_v55 }
  0xfa   :  { %v735_v57 = vmin.f32 %v671_v52, 0.0  ;;  %vm703_vm15 = vcmp.gt.f32.partialorder %v671_v52, 0.0 }
  0xfb   :  { %v669_v6 = vadd.f32 %v637_v62, %v473_v53 }
  0xfc   :  { %v782_v3 = vmul.f32 1.442695, %v735_v57  ;;  %1937 = vset.pattern.permute.xlu1 %v2077_v9  ;;  %v550_v5 = vpop.permute.xlu1 %549  ;;  %v374_v63 = vpop.permute.xlu0 %373  ;;  %v1320_v57 = vld [vmem:[%s2933_s5] sm:$0xff] }
  0xfd   :  { %v733_v2 = vmin.f32 %v669_v6, 0.0  ;;  %v638_v32 = vmul.f32 %v2365_v21, %v550_v5  ;;  %609 = vperm.xlu1 %1937, %v2305_v45   ;;  %vm701_vm12 = vcmp.gt.f32.partialorder %v669_v6, 0.0  ;;  %v447_v5 = vmul.f32 %v2352_v11, %v374_v63 }
  0xfe   :  { %1972 = vpow2.f32 %v782_v3 }
  0xff   :  { %v778_v12 = vmul.f32 1.442695, %v733_v2  ;;  %v670_v14 = vadd.f32 %v638_v32, %v474_v42  ;;  %v1874_v32 = vpack.c.bf16 %v1321_v60, %v1320_v57 }
 0x100   :  { %v1971_v9 = vpop.eup %1970 }
 0x101   :  { %1974 = vpow2.f32 %v778_v12  ;;  %v734_v48 = vmin.f32 %v670_v14, 0.0  ;;  %613 = vperm.xlu1 %1937, %v2521_v24   ;;  %v145_v44 = vpop.permute.xlu1 %144  ;;  %v1613_v22 = vadd.f32 -1.0, %v1971_v9  ;;  %vm702_vm14 = vcmp.gt.f32.partialorder %v670_v14, 0.0  ;;  %v1323_v12 = vld [vmem:[%s2933_s5 + $0x18] sm:$0xff]  ;;  %1875 = vmatprep.subr.bf16.mxu1 %v1874_v32 }
 0x102   :  { %v242_v19 = vmul.f32 %v2348_v8, %v145_v44  ;;  %1877 = vmatpush3.bf16.msra.mxu1 %v1874_v32 }
 0x103   :  { %v780_v54 = vmul.f32 1.442695, %v734_v48  ;;  %v860_v30 = vsel %vm700_vm13, %v668_v38, %v1613_v22 }
 0x104   :  { %v280_v43 = vadd.f32 %v2361_v16, %v242_v19 }
 0x105   :  { %1976 = vpow2.f32 %v780_v54  ;;  %v155_v1 = vpop.permute.xlu1 %154 }
 0x106   :  { %v244_v18 = vmul.f32 %v2348_v8, %v155_v1  ;;  %v476_v51 = vadd.f32 %v444_v20, %v280_v43 }
 0x108   :  { %v1973_v7 = vpop.eup %1972  ;;  %v282_v53 = vadd.f32 %v2361_v16, %v244_v18  ;;  %v249_v18 = vmul.f32 %v2348_v8, %v2506_v61 }
 0x109   :  { %v160_v49 = vpop.permute.xlu1 %159  ;;  %v1616_v46 = vadd.f32 -1.0, %v1973_v7 }
 0x10a   :  { %v245_v4 = vmul.f32 %v2348_v8, %v160_v49 }
 0x10b   :  { %v1975_v23 = vpop.eup %1974  ;;  %v863_v38 = vsel %vm703_vm15, %v671_v52, %v1616_v46 }
 0x10c   :  { %v1614_v45 = vadd.f32 -1.0, %v1975_v23  ;;  %v283_v3 = vadd.f32 %v2361_v16, %v245_v4 }
 0x10e   :  { %v366_v28 = vpop.permute.xlu1 %365  ;;  %v861_v24 = vsel %vm701_vm12, %v669_v6, %v1614_v45  ;;  %v1322_v6 = vld [vmem:[%s2933_s5 + $0x10] sm:$0xff]  ;;  %v479_v17 = vadd.f32 %v447_v5, %v283_v3  ;;  %v1327_v5 = vld [vmem:[%s2933_s5 + $0x38] sm:$0xff] }
 0x10f   :  { %v1977_v26 = vpop.eup %1976  ;;  %v445_v33 = vmul.f32 %v2352_v11, %v366_v28  ;;  %v886_v50 = vpack.c.bf16 %v861_v24, %v860_v30  ;;  %v1878_v44 = vpack.c.bf16 %v1323_v12, %v1322_v6  ;;  %v1326_v3 = vld [vmem:[%s2933_s5 + $0x30] sm:$0xff] }
 0x110   :  { %v1615_v40 = vadd.f32 -1.0, %v1977_v26  ;;  %v1886_v32 = vpack.c.bf16 %v1327_v5, %v1326_v3 }
 0x111   :  { %v477_v0 = vadd.f32 %v445_v33, %v281_v39  ;;  %1774 = vmatprep.mubr.bf16.mxu0 %v886_v50  ;;  %1879 = vmatprep.subr.bf16.mxu1 %v1878_v44  ;;  %v246_v33 = vmul.f32 %v2348_v8, %v2493_v36 }
 0x112   :  { %v370_v34 = vpop.permute.xlu1 %369  ;;  %v862_v35 = vsel %vm702_vm14, %v670_v14, %v1615_v40  ;;  %1881 = vmatpush3.bf16.msra.mxu1 %v1878_v44 }
 0x113   :  { %v673_v31 = vadd.f32 %v641_v59, %v477_v0  ;;  %v887_v47 = vpack.c.bf16 %v863_v38, %v862_v35  ;;  %v446_v58 = vmul.f32 %v2352_v11, %v370_v34  ;;  %v284_v0 = vadd.f32 %v2361_v16, %v246_v33 }
 0x114   :  { %v644_v38 = vmul.f32 %v2365_v21, %v2350_v10  ;;  %v1325_v10 = vld [vmem:[%s2933_s5 + $0x28] sm:$0xff] }
 0x115   :  { %v737_v41 = vmin.f32 %v673_v31, 0.0  ;;  %1775 = vmatmul.mubr.bf16.gmra.mrb[12].mxu0 %v887_v47  ;;  %v478_v42 = vadd.f32 %v446_v58, %v282_v53  ;;  %vm705_vm1 = vcmp.gt.f32.partialorder %v673_v31, 0.0  ;;  %v1324_v58 = vld [vmem:[%s2933_s5 + $0x20] sm:$0xff] }
 0x117   :  { %v558_v27 = vpop.permute.xlu1 %557  ;;  %v786_v37 = vmul.f32 1.442695, %v737_v41 }
 0x118   :  { %v640_v52 = vmul.f32 %v2365_v21, %v558_v27  ;;  %v382_v27 = vpop.permute.xlu0 %381 }
 0x119   :  { %1978 = vpow2.f32 %v786_v37  ;;  %v449_v60 = vmul.f32 %v2352_v11, %v382_v27 }
 0x11a   :  { %v672_v62 = vadd.f32 %v640_v52, %v476_v51  ;;  %v1882_v51 = vpack.c.bf16 %v1325_v10, %v1324_v58  ;;  %v287_v52 = vadd.f32 %v2361_v16, %v249_v18  ;;  %v251_v10 = vmul.f32 %v2348_v8, %v2516_v13 }
 0x11b   :  { %v566_v2 = vpop.permute.xlu1 %565  ;;  %v649_v13 = vmul.f32 %v2365_v21, %v2372_v25 }
 0x11c   :  { %v736_v14 = vmin.f32 %v672_v62, 0.0  ;;  %v642_v48 = vmul.f32 %v2365_v21, %v566_v2  ;;  %vm704_vm0 = vcmp.gt.f32.partialorder %v672_v62, 0.0  ;;  %1883 = vmatprep.subr.bf16.mxu1 %v1882_v51  ;;  %v394_v3 = vpop.permute.xlu0 %393 }
 0x11d   :  { %1885 = vmatpush3.bf16.msra.mxu1 %v1882_v51 }
 0x11e   :  { %v784_v54 = vmul.f32 1.442695, %v736_v14  ;;  %v674_v1 = vadd.f32 %v642_v48, %v478_v42  ;;  %v647_v42 = vmul.f32 %v2365_v21, %v2356_v15  ;;  %1887 = vmatprep.subr.bf16.mxu1 %v1886_v32  ;;  %v1328_v15 = vld [vmem:[%s2933_s5 + $0x40] sm:$0xff] }
 0x11f   :  { %v570_v9 = vpop.permute.xlu1 %569 }
 0x120   :  { %1980 = vpow2.f32 %v784_v54  ;;  %v738_v49 = vmin.f32 %v674_v1, 0.0  ;;  %v643_v7 = vmul.f32 %v2365_v21, %v570_v9  ;;  %vm706_vm2 = vcmp.gt.f32.partialorder %v674_v1, 0.0 }
 0x121   :  { %1889 = vmatpush3.bf16.msra.mxu1 %v1886_v32 }
 0x122   :  { %v788_v22 = vmul.f32 1.442695, %v738_v49  ;;  %v675_v23 = vadd.f32 %v643_v7, %v479_v17  ;;  %v1329_v17 = vld [vmem:[%s2933_s5 + $0x48] sm:$0xff] }
 0x123   :  { %v1979_v28 = vpop.eup %1978  ;;  %v1890_v7 = vpack.c.bf16 %v1329_v17, %v1328_v15  ;;  %v406_v17 = vpop.permute.xlu0 %405 }
 0x124   :  { %1982 = vpow2.f32 %v788_v22  ;;  %v739_v45 = vmin.f32 %v675_v23, 0.0  ;;  %v170_v39 = vpop.permute.xlu1 %169  ;;  %v1618_v46 = vadd.f32 -1.0, %v1979_v28  ;;  %vm707_vm3 = vcmp.gt.f32.partialorder %v675_v23, 0.0 }
 0x125   :  { %1891 = vmatprep.subr.bf16.mxu1 %v1890_v7 }
 0x126   :  { %v790_v30 = vmul.f32 1.442695, %v739_v45  ;;  %v865_v59 = vsel %vm705_vm1, %v673_v31, %v1618_v46  ;;  %v247_v31 = vmul.f32 %v2348_v8, %v170_v39  ;;  %1893 = vmatpush3.bf16.msra.mxu1 %v1890_v7  ;;  %v1330_v46 = vld [vmem:[%s2933_s5 + $0x50] sm:$0xff] }
 0x128   :  { %1984 = vpow2.f32 %v790_v30  ;;  %v175_v24 = vpop.permute.xlu1 %174  ;;  %v285_v57 = vadd.f32 %v2361_v16, %v247_v31 }
 0x129   :  { %v248_v12 = vmul.f32 %v2348_v8, %v175_v24 }
 0x12a   :  { %v1981_v26 = vpop.eup %1980  ;;  %v481_v44 = vadd.f32 %v449_v60, %v285_v57 }
 0x12b   :  { %v1617_v50 = vadd.f32 -1.0, %v1981_v26  ;;  %v286_v22 = vadd.f32 %v2361_v16, %v248_v12  ;;  %v1331_v26 = vld [vmem:[%s2933_s5 + $0x58] sm:$0xff] }
 0x12c   :  { %v1894_v33 = vpack.c.bf16 %v1331_v26, %v1330_v46 }
 0x12d   :  { %v378_v19 = vpop.permute.xlu1 %377  ;;  %v864_v40 = vsel %vm704_vm0, %v672_v62, %v1617_v50 }
 0x12e   :  { %v1983_v55 = vpop.eup %1982  ;;  %v448_v34 = vmul.f32 %v2352_v11, %v378_v19  ;;  %v888_v35 = vpack.c.bf16 %v865_v59, %v864_v40  ;;  %1895 = vmatprep.subr.bf16.mxu1 %v1894_v33 }
 0x12f   :  { %v1619_v20 = vadd.f32 -1.0, %v1983_v55  ;;  %1897 = vmatpush3.bf16.msra.mxu1 %v1894_v33  ;;  %v1332_v55 = vld [vmem:[%s2933_s5 + $0x60] sm:$0xff] }
 0x130   :  { %v480_v47 = vadd.f32 %v448_v34, %v284_v0  ;;  %1778 = vmatprep.mubr.bf16.mxu0 %v888_v35  ;;  %v1333_v0 = vld [vmem:[%s2933_s5 + $0x68] sm:$0xff] }
 0x131   :  { %v386_v43 = vpop.permute.xlu1 %385  ;;  %v866_v37 = vsel %vm706_vm2, %v674_v1, %v1619_v20  ;;  %v1898_v34 = vpack.c.bf16 %v1333_v0, %v1332_v55 }
 0x132   :  { %v1985_v36 = vpop.eup %1984  ;;  %v2599_v41 = vadd.f32 %v644_v38, %v480_v47  ;;  %v450_v1 = vmul.f32 %v2352_v11, %v386_v43  ;;  %v1334_v47 = vld [vmem:[%s2933_s5 + $0x70] sm:$0xff]  ;;  %v1335_v43 = vld [vmem:[%s2933_s5 + $0x78] sm:$0xff] }
 0x133   :  { %v1620_v4 = vadd.f32 -1.0, %v1985_v36  ;;  %1899 = vmatprep.subr.bf16.mxu1 %v1898_v34  ;;  %v1902_v20 = vpack.c.bf16 %v1335_v43, %v1334_v47  ;;  %v414_v47 = vpop.permute.xlu0 %413 }
 0x134   :  { %v740_v6 = vmin.f32 %v2599_v41, 0.0  ;;  %v482_v28 = vadd.f32 %v450_v1, %v286_v22  ;;  %1901 = vmatpush3.bf16.msra.mxu1 %v1898_v34  ;;  %vm708_vm5 = vcmp.gt.f32.partialorder %v2599_v41, 0.0 }
 0x135   :  { %v390_v63 = vpop.permute.xlu1 %389  ;;  %v867_v61 = vsel %vm707_vm3, %v675_v23, %v1620_v4  ;;  %1903 = vmatprep.subr.bf16.mxu1 %v1902_v20 }
 0x136   :  { %v451_v53 = vmul.f32 %v2352_v11, %v390_v63  ;;  %v889_v62 = vpack.c.bf16 %v867_v61, %v866_v37  ;;  %v792_v54 = vmul.f32 1.442695, %v740_v6 }
 0x138   :  { %v483_v2 = vadd.f32 %v451_v53, %v287_v52  ;;  %1779 = vmatmul.mubr.bf16.gmra.mrb[16].mxu0 %v889_v62  ;;  %1986 = vpow2.f32 %v792_v54  ;;  %1905 = vmatpush3.bf16.msra.mxu1 %v1902_v20  ;;  %v289_v53 = vadd.f32 %v2361_v16, %v251_v10 }
 0x13a   :  { %v2622_v14 = vadd.f32 %v647_v42, %v483_v2  ;;  %v578_v48 = vpop.permute.xlu1 %577 }
 0x13b   :  { %v645_v9 = vmul.f32 %v2365_v21, %v578_v48 }
 0x13c   :  { %v743_v49 = vmin.f32 %v2622_v14, 0.0  ;;  %vm711_vm7 = vcmp.gt.f32.partialorder %v2622_v14, 0.0 }
 0x13d   :  { %v677_v23 = vadd.f32 %v645_v9, %v481_v44  ;;  %v452_v44 = vmul.f32 %v2352_v11, %v394_v3 }
 0x13e   :  { %v798_v45 = vmul.f32 1.442695, %v743_v49  ;;  %v582_v39 = vpop.permute.xlu1 %581 }
 0x13f   :  { %v741_v30 = vmin.f32 %v677_v23, 0.0  ;;  %v646_v24 = vmul.f32 %v2365_v21, %v582_v39  ;;  %vm709_vm4 = vcmp.gt.f32.partialorder %v677_v23, 0.0  ;;  %v455_v39 = vmul.f32 %v2352_v11, %v406_v17 }
 0x140   :  { %1988 = vpow2.f32 %v798_v45 }
 0x141   :  { %v794_v50 = vmul.f32 1.442695, %v741_v30  ;;  %v678_v19 = vadd.f32 %v646_v24, %v482_v28 }
 0x142   :  { %v1987_v36 = vpop.eup %1986 }
 0x143   :  { %1990 = vpow2.f32 %v794_v50  ;;  %v742_v40 = vmin.f32 %v678_v19, 0.0  ;;  %v185_v59 = vpop.permute.xlu1 %184  ;;  %v1621_v4 = vadd.f32 -1.0, %v1987_v36  ;;  %vm710_vm6 = vcmp.gt.f32.partialorder %v678_v19, 0.0 }
 0x144   :  { %v250_v60 = vmul.f32 %v2348_v8, %v185_v59 }
 0x145   :  { %v796_v35 = vmul.f32 1.442695, %v742_v40  ;;  %v868_v63 = vsel %vm708_vm5, %v2599_v41, %v1621_v4  ;;  %v606_v4 = vpop.permute.xlu0 %605 }
 0x146   :  { %v288_v48 = vadd.f32 %v2361_v16, %v250_v60 }
 0x147   :  { %1992 = vpow2.f32 %v796_v35  ;;  %v195_v38 = vpop.permute.xlu1 %194 }
 0x148   :  { %v252_v25 = vmul.f32 %v2348_v8, %v195_v38  ;;  %v484_v15 = vadd.f32 %v452_v44, %v288_v48 }
 0x14a   :  { %v1989_v31 = vpop.eup %1988  ;;  %v290_v22 = vadd.f32 %v2361_v16, %v252_v25 }
 0x14b   :  { %v200_v18 = vpop.permute.xlu1 %199  ;;  %v1624_v61 = vadd.f32 -1.0, %v1989_v31 }
 0x14c   :  { %v253_v1 = vmul.f32 %v2348_v8, %v200_v18  ;;  %v254_v18 = vmul.f32 %v2348_v8, %v2527_v29 }
 0x14d   :  { %v1991_v58 = vpop.eup %1990  ;;  %v871_v2 = vsel %vm711_vm7, %v2622_v14, %v1624_v61 }
 0x14e   :  { %v1622_v27 = vadd.f32 -1.0, %v1991_v58  ;;  %v291_v45 = vadd.f32 %v2361_v16, %v253_v1 }
 0x150   :  { %v398_v51 = vpop.permute.xlu1 %397  ;;  %v869_v37 = vsel %vm709_vm4, %v677_v23, %v1622_v27 }
 0x151   :  { %v1993_v52 = vpop.eup %1992  ;;  %v453_v62 = vmul.f32 %v2352_v11, %v398_v51  ;;  %v890_v57 = vpack.c.bf16 %v869_v37, %v868_v63  ;;  %v2074_v63 = vld [vmem:[%s2932_s2] ss:$0 sm:$0xff] }
 0x152   :  { %v1623_v6 = vadd.f32 -1.0, %v1993_v52  ;;  %v292_v37 = vadd.f32 %v2074_v63, %v254_v18 }
 0x153   :  { %v485_v5 = vadd.f32 %v453_v62, %v289_v53  ;;  %1782 = vmatprep.mubr.bf16.mxu0 %v890_v57  ;;  %v652_v53 = vmul.f32 %v2365_v21, %v606_v4 }
 0x154   :  { %v402_v41 = vpop.permute.xlu1 %401  ;;  %v870_v42 = vsel %vm710_vm6, %v678_v19, %v1623_v6  ;;  %v487_v19 = vadd.f32 %v455_v39, %v291_v45  ;;  %v257_v6 = vmul.f32 %v2348_v8, %v2537_v56  ;;  %v457_v56 = vmul.f32 %v2352_v11, %v414_v47 }
 0x155   :  { %v681_v32 = vadd.f32 %v649_v13, %v485_v5  ;;  %v891_v12 = vpack.c.bf16 %v871_v2, %v870_v42  ;;  %v454_v7 = vmul.f32 %v2352_v11, %v402_v41  ;;  %v618_v5 = vpop.permute.xlu0 %617 }
 0x156   :  { %v655_v44 = vmul.f32 %v2365_v21, %v618_v5 }
 0x157   :  { %v745_v54 = vmin.f32 %v681_v32, 0.0  ;;  %1783 = vmatmul.mubr.bf16.gmra.mrb[20].mxu0 %v891_v12  ;;  %v486_v30 = vadd.f32 %v454_v7, %v290_v22  ;;  %vm713_vm9 = vcmp.gt.f32.partialorder %v681_v32, 0.0  ;;  %v295_v12 = vadd.f32 %v2074_v63, %v257_v6 }
 0x159   :  { %v590_v9 = vpop.permute.xlu1 %589  ;;  %v802_v49 = vmul.f32 1.442695, %v745_v54 }
 0x15a   :  { %v648_v14 = vmul.f32 %v2365_v21, %v590_v9 }
 0x15b   :  { %1994 = vpow2.f32 %v802_v49 }
 0x15c   :  { %v680_v23 = vadd.f32 %v648_v14, %v484_v15 }
 0x15d   :  { %v598_v28 = vpop.permute.xlu1 %597 }
 0x15e   :  { %v744_v24 = vmin.f32 %v680_v23, 0.0  ;;  %v650_v46 = vmul.f32 %v2365_v21, %v598_v28  ;;  %vm712_vm8 = vcmp.gt.f32.partialorder %v680_v23, 0.0 }
 0x160   :  { %v800_v26 = vmul.f32 1.442695, %v744_v24  ;;  %v682_v33 = vadd.f32 %v650_v46, %v486_v30 }
 0x161   :  { %v602_v50 = vpop.permute.xlu1 %601 }
 0x162   :  { %1996 = vpow2.f32 %v800_v26  ;;  %v746_v40 = vmin.f32 %v682_v33, 0.0  ;;  %v651_v59 = vmul.f32 %v2365_v21, %v602_v50  ;;  %vm714_vm10 = vcmp.gt.f32.partialorder %v682_v33, 0.0 }
 0x164   :  { %v804_v55 = vmul.f32 1.442695, %v746_v40  ;;  %v683_v0 = vadd.f32 %v651_v59, %v487_v19 }
 0x165   :  { %v1995_v35 = vpop.eup %1994 }
 0x166   :  { %1998 = vpow2.f32 %v804_v55  ;;  %v747_v16 = vmin.f32 %v683_v0, 0.0  ;;  %v210_v34 = vpop.permute.xlu1 %209  ;;  %v1626_v20 = vadd.f32 -1.0, %v1995_v35  ;;  %vm715_vm11 = vcmp.gt.f32.partialorder %v683_v0, 0.0 }
 0x167   :  { %v255_v13 = vmul.f32 %v2348_v8, %v210_v34 }
 0x168   :  { %v806_v38 = vmul.f32 1.442695, %v747_v16  ;;  %v873_v27 = vsel %vm713_vm9, %v681_v32, %v1626_v20 }
 0x169   :  { %v293_v25 = vadd.f32 %v2074_v63, %v255_v13 }
 0x16a   :  { %2000 = vpow2.f32 %v806_v38  ;;  %v215_v43 = vpop.permute.xlu1 %214 }
 0x16b   :  { %v256_v15 = vmul.f32 %v2348_v8, %v215_v43  ;;  %v489_v22 = vadd.f32 %v457_v56, %v293_v25 }
 0x16c   :  { %v1997_v36 = vpop.eup %1996 }
 0x16d   :  { %v1625_v31 = vadd.f32 -1.0, %v1997_v36  ;;  %v294_v39 = vadd.f32 %v2074_v63, %v256_v15 }
 0x16f   :  { %v410_v58 = vpop.permute.xlu1 %409  ;;  %v872_v10 = vsel %vm712_vm8, %v680_v23, %v1625_v31  ;;  %v2695_v31 = vld [vmem:[%s2934_s4] ss:$0 sm:$0xff] }
 0x170   :  { %v1999_v51 = vpop.eup %1998  ;;  %v456_v61 = vmul.f32 %v2352_v11, %v410_v58  ;;  %v892_v52 = vpack.c.bf16 %v873_v27, %v872_v10 }
 0x171   :  { %v1627_v57 = vadd.f32 -1.0, %v1999_v51 }
 0x172   :  { %v488_v62 = vadd.f32 %v456_v61, %v292_v37  ;;  %1786 = vmatprep.mubr.bf16.mxu0 %v892_v52 }
 0x173   :  { %v418_v29 = vpop.permute.xlu1 %417  ;;  %v874_v2 = vsel %vm714_vm10, %v682_v33, %v1627_v57 }
 0x174   :  { %v2001_v60 = vpop.eup %2000  ;;  %v684_v3 = vadd.f32 %v652_v53, %v488_v62  ;;  %v458_v14 = vmul.f32 %v2352_v11, %v418_v29 }
 0x175   :  { %v1628_v41 = vadd.f32 -1.0, %v2001_v60 }
 0x176   :  { %v748_v1 = vmin.f32 %v684_v3, 0.0  ;;  %v490_v46 = vadd.f32 %v458_v14, %v294_v39  ;;  %vm716_vm12 = vcmp.gt.f32.partialorder %v684_v3, 0.0 }
 0x177   :  { %v422_v42 = vpop.permute.xlu1 %421  ;;  %v875_v32 = vsel %vm715_vm11, %v683_v0, %v1628_v41 }
 0x178   :  { %v459_v48 = vmul.f32 %v2352_v11, %v422_v42  ;;  %v893_v54 = vpack.c.bf16 %v875_v32, %v874_v2  ;;  %v808_v7 = vmul.f32 1.442695, %v748_v1 }
 0x17a   :  { %v491_v9 = vadd.f32 %v459_v48, %v295_v12  ;;  %1787 = vmatmul.mubr.bf16.gmra.mrb[24].mxu0 %v893_v54  ;;  %2002 = vpow2.f32 %v808_v7 }
 0x17c   :  { %v687_v17 = vadd.f32 %v655_v44, %v491_v9  ;;  %v610_v49 = vpop.permute.xlu1 %609 }
 0x17d   :  { %v653_v23 = vmul.f32 %v2365_v21, %v610_v49 }
 0x17e   :  { %v751_v45 = vmin.f32 %v687_v17, 0.0  ;;  %vm719_vm14 = vcmp.gt.f32.partialorder %v687_v17, 0.0 }
 0x17f   :  { %v685_v28 = vadd.f32 %v653_v23, %v489_v22 }
 0x180   :  { %v814_v30 = vmul.f32 1.442695, %v751_v45  ;;  %v614_v24 = vpop.permute.xlu1 %613 }
 0x181   :  { %v749_v26 = vmin.f32 %v685_v28, 0.0  ;;  %v654_v33 = vmul.f32 %v2365_v21, %v614_v24  ;;  %vm717_vm13 = vcmp.gt.f32.partialorder %v685_v28, 0.0 }
 0x182   :  { %2004 = vpow2.f32 %v814_v30 }
 0x183   :  { %v810_v50 = vmul.f32 1.442695, %v749_v26  ;;  %v686_v8 = vadd.f32 %v654_v33, %v490_v46 }
 0x184   :  { %v2003_v11 = vpop.eup %2002 }
 0x185   :  { %2006 = vpow2.f32 %v810_v50  ;;  %v750_v19 = vmin.f32 %v686_v8, 0.0  ;;  %v1629_v55 = vadd.f32 -1.0, %v2003_v11  ;;  %vm718_vm15 = vcmp.gt.f32.partialorder %v686_v8, 0.0 }
 0x187   :  { %v812_v40 = vmul.f32 1.442695, %v750_v19  ;;  %v876_v34 = vsel %vm716_vm12, %v684_v3, %v1629_v55 }
 0x189   :  { %2008 = vpow2.f32 %v812_v40 }
 0x18c   :  { %v2005_v59 = vpop.eup %2004 }
 0x18d   :  { %v1632_v38 = vadd.f32 -1.0, %v2005_v59 }
 0x18f   :  { %v2007_v0 = vpop.eup %2006  ;;  %v879_v36 = vsel %vm719_vm14, %v687_v17, %v1632_v38 }
 0x190   :  { %v1630_v16 = vadd.f32 -1.0, %v2007_v0 }
 0x192   :  { %v877_v35 = vsel %vm717_vm13, %v685_v28, %v1630_v16 }
 0x193   :  { %v2009_v47 = vpop.eup %2008  ;;  %v894_v43 = vpack.c.bf16 %v877_v35, %v876_v34 }
 0x194   :  { %v1631_v21 = vadd.f32 -1.0, %v2009_v47 }
 0x195   :  { %1790 = vmatprep.mubr.bf16.mxu0 %v894_v43 }
 0x196   :  { %v878_v20 = vsel %vm718_vm15, %v686_v8, %v1631_v21 }
 0x197   :  { %v895_v18 = vpack.c.bf16 %v879_v36, %v878_v20 }
 0x199   :  { %1791 = vmatmul.mubr.bf16.gmra.mrb[28].mxu0 %v895_v18 }
 0x1b4   :  { %v1764_v4 = vpop.f32.mrb[0].mxu0 }
 0x1b5   :  { %v2698_v58 = vadd.f32 %v1764_v4, %v2695_v31  ;;  %v1001_v10 = vpop.f32.mrb[1].mxu0 }
 0x1b6   :  { %v1002_v27 = vadd.f32 %v2695_v31, %v1001_v10  ;;  %v1765_v51 = vpop.f32.mrb[2].mxu0 }
 0x1b7   :  { %v1162_v63 = vmin.f32 %v2698_v58, 0.0  ;;  %v2703_v37 = vadd.f32 %v1765_v51, %v2695_v31  ;;  %v1004_v61 = vpop.f32.mrb[3].mxu0  ;;  %vm1130_vm2 = vcmp.gt.f32.partialorder %v2698_v58, 0.0 }
 0x1b8   :  { %v1160_v52 = vmin.f32 %v1002_v27, 0.0  ;;  %v1005_v53 = vadd.f32 %v2695_v31, %v1004_v61  ;;  %vm1128_vm0 = vcmp.gt.f32.partialorder %v1002_v27, 0.0 }
 0x1b9   :  { %v1196_v62 = vmul.f32 1.442695, %v1162_v63  ;;  %v1163_v29 = vmin.f32 %v2703_v37, 0.0  ;;  %vm1131_vm3 = vcmp.gt.f32.partialorder %v2703_v37, 0.0 }
 0x1ba   :  { %v1192_v57 = vmul.f32 1.442695, %v1160_v52  ;;  %v1161_v60 = vmin.f32 %v1005_v53, 0.0  ;;  %vm1129_vm1 = vcmp.gt.f32.partialorder %v1005_v53, 0.0 }
 0x1bb   :  { %2010 = vpow2.f32 %v1196_v62  ;;  %v1198_v6 = vmul.f32 1.442695, %v1163_v29 }
 0x1bc   :  { %2012 = vpow2.f32 %v1192_v57  ;;  %v1194_v13 = vmul.f32 1.442695, %v1161_v60  ;;  %v1768_v3 = vpop.f32.mrb[4].mxu0 }
 0x1bd   :  { %2014 = vpow2.f32 %v1198_v6  ;;  %v2708_v5 = vadd.f32 %v1768_v3, %v2695_v31  ;;  %v1017_v41 = vpop.f32.mrb[5].mxu0 }
 0x1be   :  { %2016 = vpow2.f32 %v1194_v13  ;;  %v2711_v42 = vadd.f32 %v2695_v31, %v1017_v41  ;;  %v1769_v2 = vpop.f32.mrb[6].mxu0 }
 0x1bf   :  { %v1166_v32 = vmin.f32 %v2708_v5, 0.0  ;;  %v2715_v12 = vadd.f32 %v1769_v2, %v2695_v31  ;;  %v1020_v48 = vpop.f32.mrb[7].mxu0  ;;  %vm1134_vm6 = vcmp.gt.f32.partialorder %v2708_v5, 0.0 }
 0x1c0   :  { %v1164_v44 = vmin.f32 %v2711_v42, 0.0  ;;  %v2719_v54 = vadd.f32 %v2695_v31, %v1020_v48  ;;  %vm1132_vm4 = vcmp.gt.f32.partialorder %v2711_v42, 0.0 }
 0x1c1   :  { %v1204_v25 = vmul.f32 1.442695, %v1166_v32  ;;  %v1167_v1 = vmin.f32 %v2715_v12, 0.0  ;;  %vm1135_vm7 = vcmp.gt.f32.partialorder %v2715_v12, 0.0 }
 0x1c2   :  { %v1200_v9 = vmul.f32 1.442695, %v1164_v44  ;;  %v1165_v56 = vmin.f32 %v2719_v54, 0.0  ;;  %vm1133_vm5 = vcmp.gt.f32.partialorder %v2719_v54, 0.0 }
 0x1c3   :  { %2018 = vpow2.f32 %v1204_v25  ;;  %v1206_v15 = vmul.f32 1.442695, %v1167_v1 }
 0x1c4   :  { %2020 = vpow2.f32 %v1200_v9  ;;  %v1202_v17 = vmul.f32 1.442695, %v1165_v56 }
 0x1c5   :  { %v2011_v49 = vpop.eup %2010  ;;  %2022 = vpow2.f32 %v1206_v15 }
 0x1c6   :  { %v2013_v7 = vpop.eup %2012  ;;  %2024 = vpow2.f32 %v1202_v17  ;;  %v1644_v39 = vadd.f32 -1.0, %v2011_v49 }
 0x1c7   :  { %v2015_v14 = vpop.eup %2014  ;;  %v1642_v22 = vadd.f32 -1.0, %v2013_v7 }
 0x1c8   :  { %v2017_v23 = vpop.eup %2016  ;;  %v1645_v11 = vadd.f32 -1.0, %v2015_v14  ;;  %v1290_v0 = vsel %vm1130_vm2, %v2698_v58, %v1644_v39 }
 0x1c9   :  { %v1772_v45 = vpop.f32.mrb[8].mxu0  ;;  %v1288_v24 = vsel %vm1128_vm0, %v1002_v27, %v1642_v22  ;;  %v1643_v46 = vadd.f32 -1.0, %v2017_v23 }
 0x1ca   :  { %v2724_v28 = vadd.f32 %v1772_v45, %v2695_v31  ;;  %v1033_v30 = vpop.f32.mrb[9].mxu0  ;;  %1826 = vmatprep.mubr.f32.mxu1 %v1288_v24  ;;  %v1291_v36 = vsel %vm1131_vm3, %v2703_v37, %v1645_v11 }
 0x1cb   :  { %v1034_v26 = vadd.f32 %v2695_v31, %v1033_v30  ;;  %v1773_v33 = vpop.f32.mrb[10].mxu0  ;;  %v1289_v40 = vsel %vm1129_vm1, %v1005_v53, %v1643_v46 }
 0x1cc   :  { %v1170_v50 = vmin.f32 %v2724_v28, 0.0  ;;  %v1045_v8 = vadd.f32 %v1773_v33, %v2695_v31  ;;  %v1036_v19 = vpop.f32.mrb[11].mxu0  ;;  %1827 = vmatmul.mubr.f32.vlgmr.msra.gmra.mrb[0].mxu1 %v1289_v40  ;;  %vm1138_vm10 = vcmp.gt.f32.partialorder %v2724_v28, 0.0 }
 0x1cd   :  { %v1168_v59 = vmin.f32 %v1034_v26, 0.0  ;;  %v1037_v55 = vadd.f32 %v2695_v31, %v1036_v19  ;;  %v2019_v16 = vpop.eup %2018  ;;  %1829 = vmatprep.mubr.f32.mxu1 %v1290_v0  ;;  %vm1136_vm8 = vcmp.gt.f32.partialorder %v1034_v26, 0.0 }
 0x1ce   :  { %v1212_v34 = vmul.f32 1.442695, %v1170_v50  ;;  %v1171_v35 = vmin.f32 %v1045_v8, 0.0  ;;  %v2021_v38 = vpop.eup %2020  ;;  %v1648_v58 = vadd.f32 -1.0, %v2019_v16  ;;  %vm1139_vm11 = vcmp.gt.f32.partialorder %v1045_v8, 0.0 }
 0x1cf   :  { %v1208_v47 = vmul.f32 1.442695, %v1168_v59  ;;  %v1169_v43 = vmin.f32 %v1037_v55, 0.0  ;;  %v2023_v21 = vpop.eup %2022  ;;  %v1646_v18 = vadd.f32 -1.0, %v2021_v38  ;;  %vm1137_vm9 = vcmp.gt.f32.partialorder %v1037_v55, 0.0 }
 0x1d0   :  { %2026 = vpow2.f32 %v1212_v34  ;;  %v1214_v20 = vmul.f32 1.442695, %v1171_v35  ;;  %v2025_v4 = vpop.eup %2024  ;;  %1830 = vmatmul.mubr.f32.gmra.mrb[2].mxu1 %v1291_v36  ;;  %v1649_v37 = vadd.f32 -1.0, %v2023_v21  ;;  %v1294_v61 = vsel %vm1134_vm6, %v2708_v5, %v1648_v58 }
 0x1d1   :  { %2028 = vpow2.f32 %v1208_v47  ;;  %v1210_v10 = vmul.f32 1.442695, %v1169_v43  ;;  %v1292_v27 = vsel %vm1132_vm4, %v2711_v42, %v1646_v18  ;;  %v1647_v51 = vadd.f32 -1.0, %v2025_v4 }
 0x1d2   :  { %2030 = vpow2.f32 %v1214_v20  ;;  %1832 = vmatprep.mubr.f32.mxu1 %v1292_v27  ;;  %v1295_v52 = vsel %vm1135_vm7, %v2715_v12, %v1649_v37 }
 0x1d3   :  { %2032 = vpow2.f32 %v1210_v10  ;;  %v1293_v63 = vsel %vm1133_vm5, %v2719_v54, %v1647_v51 }
 0x1d4   :  { %1833 = vmatmul.mubr.f32.gmra.mrb[4].mxu1 %v1293_v63 }
 0x1d5   :  { %1835 = vmatprep.mubr.f32.mxu1 %v1294_v61 }
 0x1d8   :  { %1836 = vmatmul.mubr.f32.gmra.mrb[6].mxu1 %v1295_v52 }
 0x1da   :  { %v2027_v53 = vpop.eup %2026 }
 0x1db   :  { %v2029_v62 = vpop.eup %2028  ;;  %v1652_v6 = vadd.f32 -1.0, %v2027_v53 }
 0x1dc   :  { %v2031_v29 = vpop.eup %2030  ;;  %v1650_v57 = vadd.f32 -1.0, %v2029_v62 }
 0x1dd   :  { %v2033_v60 = vpop.eup %2032  ;;  %v1653_v5 = vadd.f32 -1.0, %v2031_v29  ;;  %v1298_v42 = vsel %vm1138_vm10, %v2724_v28, %v1652_v6 }
 0x1de   :  { %v1296_v13 = vsel %vm1136_vm8, %v1034_v26, %v1650_v57  ;;  %v1651_v3 = vadd.f32 -1.0, %v2033_v60 }
 0x1df   :  { %1838 = vmatprep.mubr.f32.mxu1 %v1296_v13  ;;  %v1299_v2 = vsel %vm1139_vm11, %v1045_v8, %v1653_v5 }
 0x1e0   :  { %v1297_v41 = vsel %vm1137_vm9, %v1037_v55, %v1651_v3 }
 0x1e1   :  { %1839 = vmatmul.mubr.f32.gmra.mrb[8].mxu1 %v1297_v41 }
 0x1e2   :  { %1841 = vmatprep.mubr.f32.mxu1 %v1298_v42 }
 0x1e5   :  { %1842 = vmatmul.mubr.f32.gmra.mrb[10].mxu1 %v1299_v2 }
 0x1e8   :  { %v1776_v32 = vpop.f32.mrb[12].mxu0 }
 0x1e9   :  { %v1058_v12 = vadd.f32 %v1776_v32, %v2695_v31  ;;  %v1049_v48 = vpop.f32.mrb[13].mxu0 }
 0x1ea   :  { %v1050_v44 = vadd.f32 %v2695_v31, %v1049_v48  ;;  %v1777_v54 = vpop.f32.mrb[14].mxu0 }
 0x1eb   :  { %v1174_v25 = vmin.f32 %v1058_v12, 0.0  ;;  %v1061_v1 = vadd.f32 %v1777_v54, %v2695_v31  ;;  %v1052_v9 = vpop.f32.mrb[15].mxu0  ;;  %vm1142_vm14 = vcmp.gt.f32.partialorder %v1058_v12, 0.0 }
 0x1ec   :  { %v1172_v56 = vmin.f32 %v1050_v44, 0.0  ;;  %v1053_v15 = vadd.f32 %v2695_v31, %v1052_v9  ;;  %vm1140_vm12 = vcmp.gt.f32.partialorder %v1050_v44, 0.0 }
 0x1ed   :  { %v1220_v17 = vmul.f32 1.442695, %v1174_v25  ;;  %v1175_v49 = vmin.f32 %v1061_v1, 0.0  ;;  %vm1143_vm15 = vcmp.gt.f32.partialorder %v1061_v1, 0.0 }
 0x1ee   :  { %v1216_v7 = vmul.f32 1.442695, %v1172_v56  ;;  %v1173_v14 = vmin.f32 %v1053_v15, 0.0  ;;  %vm1141_vm13 = vcmp.gt.f32.partialorder %v1053_v15, 0.0 }
 0x1ef   :  { %2034 = vpow2.f32 %v1220_v17  ;;  %v1222_v22 = vmul.f32 1.442695, %v1175_v49 }
 0x1f0   :  { %2036 = vpow2.f32 %v1216_v7  ;;  %v1218_v23 = vmul.f32 1.442695, %v1173_v14 }
 0x1f1   :  { %2038 = vpow2.f32 %v1222_v22 }
 0x1f2   :  { %2040 = vpow2.f32 %v1218_v23 }
 0x1f9   :  { %v2035_v45 = vpop.eup %2034 }
 0x1fa   :  { %v2037_v39 = vpop.eup %2036  ;;  %v1656_v46 = vadd.f32 -1.0, %v2035_v45 }
 0x1fb   :  { %v2039_v28 = vpop.eup %2038  ;;  %v1654_v30 = vadd.f32 -1.0, %v2037_v39 }
 0x1fc   :  { %v2041_v24 = vpop.eup %2040  ;;  %v1657_v8 = vadd.f32 -1.0, %v2039_v28  ;;  %v1302_v19 = vsel %vm1142_vm14, %v1058_v12, %v1656_v46 }
 0x1fd   :  { %v1300_v26 = vsel %vm1140_vm12, %v1050_v44, %v1654_v30  ;;  %v1655_v33 = vadd.f32 -1.0, %v2041_v24 }
 0x1fe   :  { %1844 = vmatprep.mubr.f32.mxu1 %v1300_v26  ;;  %v1303_v40 = vsel %vm1143_vm15, %v1061_v1, %v1657_v8 }
 0x1ff   :  { %v1301_v50 = vsel %vm1141_vm13, %v1053_v15, %v1655_v33 }
 0x200   :  { %1845 = vmatmul.mubr.f32.gmra.mrb[12].mxu1 %v1301_v50 }
 0x201   :  { %1847 = vmatprep.mubr.f32.mxu1 %v1302_v19 }
 0x204   :  { %1848 = vmatmul.mubr.f32.gmra.mrb[14].mxu1 %v1303_v40 }
 0x20b   :  { %v1780_v11 = vpop.f32.mrb[16].mxu0 }
 0x20c   :  { %v1074_v59 = vadd.f32 %v1780_v11, %v2695_v31  ;;  %v1065_v55 = vpop.f32.mrb[17].mxu0 }
 0x20d   :  { %v1066_v0 = vadd.f32 %v2695_v31, %v1065_v55  ;;  %v1781_v16 = vpop.f32.mrb[18].mxu0 }
 0x20e   :  { %v1178_v34 = vmin.f32 %v1074_v59, 0.0  ;;  %v1077_v35 = vadd.f32 %v1781_v16, %v2695_v31  ;;  %v1068_v38 = vpop.f32.mrb[19].mxu0  ;;  %vm1146_vm2 = vcmp.gt.f32.partialorder %v1074_v59, 0.0 }
 0x20f   :  { %v1176_v47 = vmin.f32 %v1066_v0, 0.0  ;;  %v1069_v43 = vadd.f32 %v2695_v31, %v1068_v38  ;;  %vm1144_vm0 = vcmp.gt.f32.partialorder %v1066_v0, 0.0 }
 0x210   :  { %v1228_v21 = vmul.f32 1.442695, %v1178_v34  ;;  %v1179_v20 = vmin.f32 %v1077_v35, 0.0  ;;  %vm1147_vm3 = vcmp.gt.f32.partialorder %v1077_v35, 0.0 }
 0x211   :  { %v1224_v36 = vmul.f32 1.442695, %v1176_v47  ;;  %v1177_v18 = vmin.f32 %v1069_v43, 0.0  ;;  %vm1145_vm1 = vcmp.gt.f32.partialorder %v1069_v43, 0.0 }
 0x212   :  { %2042 = vpow2.f32 %v1228_v21  ;;  %v1230_v4 = vmul.f32 1.442695, %v1179_v20 }
 0x213   :  { %2044 = vpow2.f32 %v1224_v36  ;;  %v1226_v10 = vmul.f32 1.442695, %v1177_v18 }
 0x214   :  { %2046 = vpow2.f32 %v1230_v4 }
 0x215   :  { %2048 = vpow2.f32 %v1226_v10 }
 0x21c   :  { %v2043_v58 = vpop.eup %2042 }
 0x21d   :  { %v2045_v27 = vpop.eup %2044  ;;  %v1660_v61 = vadd.f32 -1.0, %v2043_v58 }
 0x21e   :  { %v2047_v51 = vpop.eup %2046  ;;  %v1658_v63 = vadd.f32 -1.0, %v2045_v27 }
 0x21f   :  { %v2049_v37 = vpop.eup %2048  ;;  %v1661_v29 = vadd.f32 -1.0, %v2047_v51  ;;  %v1306_v57 = vsel %vm1146_vm2, %v1074_v59, %v1660_v61 }
 0x220   :  { %v1304_v52 = vsel %vm1144_vm0, %v1066_v0, %v1658_v63  ;;  %v1659_v53 = vadd.f32 -1.0, %v2049_v37  ;;  %vm1563_vm0 = vcmask 7168  }
 0x221   :  { %1850 = vmatprep.mubr.f32.mxu1 %v1304_v52  ;;  %v1307_v60 = vsel %vm1147_vm3, %v1077_v35, %v1661_v29 }
 0x222   :  { %v1305_v62 = vsel %vm1145_vm1, %v1069_v43, %v1659_v53 }
 0x223   :  { %1851 = vmatmul.mubr.f32.gmra.mrb[16].mxu1 %v1305_v62 }
 0x224   :  { %1853 = vmatprep.mubr.f32.mxu1 %v1306_v57 }
 0x227   :  { %1854 = vmatmul.mubr.f32.gmra.mrb[18].mxu1 %v1307_v60 }
 0x22a   :  { %v1784_v6 = vpop.f32.mrb[20].mxu0 }
 0x22b   :  { %v1090_v13 = vadd.f32 %v1784_v6, %v2695_v31  ;;  %v1081_v3 = vpop.f32.mrb[21].mxu0 }
 0x22c   :  { %v1082_v41 = vadd.f32 %v2695_v31, %v1081_v3  ;;  %v1785_v5 = vpop.f32.mrb[22].mxu0 }
 0x22d   :  { %v1182_v42 = vmin.f32 %v1090_v13, 0.0  ;;  %v1093_v2 = vadd.f32 %v1785_v5, %v2695_v31  ;;  %v1084_v32 = vpop.f32.mrb[23].mxu0  ;;  %vm1150_vm6 = vcmp.gt.f32.partialorder %v1090_v13, 0.0 }
 0x22e   :  { %v1180_v12 = vmin.f32 %v1082_v41, 0.0  ;;  %v1085_v48 = vadd.f32 %v2695_v31, %v1084_v32  ;;  %vm1148_vm4 = vcmp.gt.f32.partialorder %v1082_v41, 0.0 }
 0x22f   :  { %v1236_v44 = vmul.f32 1.442695, %v1182_v42  ;;  %v1183_v54 = vmin.f32 %v1093_v2, 0.0  ;;  %vm1151_vm7 = vcmp.gt.f32.partialorder %v1093_v2, 0.0 }
 0x230   :  { %v1232_v25 = vmul.f32 1.442695, %v1180_v12  ;;  %v1181_v1 = vmin.f32 %v1085_v48, 0.0  ;;  %vm1149_vm5 = vcmp.gt.f32.partialorder %v1085_v48, 0.0 }
 0x231   :  { %2050 = vpow2.f32 %v1236_v44  ;;  %v1238_v9 = vmul.f32 1.442695, %v1183_v54 }
 0x232   :  { %2052 = vpow2.f32 %v1232_v25  ;;  %v1234_v56 = vmul.f32 1.442695, %v1181_v1 }
 0x233   :  { %2054 = vpow2.f32 %v1238_v9 }
 0x234   :  { %2056 = vpow2.f32 %v1234_v56 }
 0x23b   :  { %v2051_v15 = vpop.eup %2050 }
 0x23c   :  { %v2053_v17 = vpop.eup %2052  ;;  %v1664_v22 = vadd.f32 -1.0, %v2051_v15 }
 0x23d   :  { %v2055_v49 = vpop.eup %2054  ;;  %v1662_v7 = vadd.f32 -1.0, %v2053_v17 }
 0x23e   :  { %v2057_v14 = vpop.eup %2056  ;;  %v1665_v28 = vadd.f32 -1.0, %v2055_v49  ;;  %v1310_v30 = vsel %vm1150_vm6, %v1090_v13, %v1664_v22 }
 0x23f   :  { %v1308_v23 = vsel %vm1148_vm4, %v1082_v41, %v1662_v7  ;;  %v1663_v45 = vadd.f32 -1.0, %v2057_v14  ;;  %v2767_v14 = vstv %s2935_s6 }
 0x240   :  { %1856 = vmatprep.mubr.f32.mxu1 %v1308_v23  ;;  %v1311_v24 = vsel %vm1151_vm7, %v1093_v2, %v1665_v28 }
 0x241   :  { %v1309_v39 = vsel %vm1149_vm5, %v1085_v48, %v1663_v45 }
 0x242   :  { %1857 = vmatmul.mubr.f32.gmra.mrb[20].mxu1 %v1309_v39 }
 0x243   :  { %1859 = vmatprep.mubr.f32.mxu1 %v1310_v30 }
 0x246   :  { %1860 = vmatmul.mubr.f32.gmra.mrb[22].mxu1 %v1311_v24 }
 0x24d   :  { %v1788_v46 = vpop.f32.mrb[24].mxu0 }
 0x24e   :  { %v1106_v26 = vadd.f32 %v1788_v46, %v2695_v31  ;;  %v1097_v33 = vpop.f32.mrb[25].mxu0 }
 0x24f   :  { %v1098_v50 = vadd.f32 %v2695_v31, %v1097_v33  ;;  %v1789_v8 = vpop.f32.mrb[26].mxu0 }
 0x250   :  { %v1186_v19 = vmin.f32 %v1106_v26, 0.0  ;;  %v1109_v40 = vadd.f32 %v1789_v8, %v2695_v31  ;;  %v1100_v11 = vpop.f32.mrb[27].mxu0  ;;  %vm1154_vm10 = vcmp.gt.f32.partialorder %v1106_v26, 0.0 }
 0x251   :  { %v1184_v59 = vmin.f32 %v1098_v50, 0.0  ;;  %v1101_v55 = vadd.f32 %v2695_v31, %v1100_v11  ;;  %vm1152_vm8 = vcmp.gt.f32.partialorder %v1098_v50, 0.0 }
 0x252   :  { %v1244_v0 = vmul.f32 1.442695, %v1186_v19  ;;  %v1187_v16 = vmin.f32 %v1109_v40, 0.0  ;;  %vm1155_vm11 = vcmp.gt.f32.partialorder %v1109_v40, 0.0 }
 0x253   :  { %v1240_v34 = vmul.f32 1.442695, %v1184_v59  ;;  %v1185_v35 = vmin.f32 %v1101_v55, 0.0  ;;  %vm1153_vm9 = vcmp.gt.f32.partialorder %v1101_v55, 0.0 }
 0x254   :  { %2058 = vpow2.f32 %v1244_v0  ;;  %v1246_v38 = vmul.f32 1.442695, %v1187_v16 }
 0x255   :  { %2060 = vpow2.f32 %v1240_v34  ;;  %v1242_v47 = vmul.f32 1.442695, %v1185_v35 }
 0x256   :  { %2062 = vpow2.f32 %v1246_v38 }
 0x257   :  { %2064 = vpow2.f32 %v1242_v47 }
 0x25e   :  { %v2059_v43 = vpop.eup %2058 }
 0x25f   :  { %v2061_v21 = vpop.eup %2060  ;;  %v1668_v4 = vadd.f32 -1.0, %v2059_v43 }
 0x260   :  { %v2063_v20 = vpop.eup %2062  ;;  %v1666_v36 = vadd.f32 -1.0, %v2061_v21 }
 0x261   :  { %v2065_v18 = vpop.eup %2064  ;;  %v1669_v51 = vadd.f32 -1.0, %v2063_v20  ;;  %v1314_v63 = vsel %vm1154_vm10, %v1106_v26, %v1668_v4 }
 0x262   :  { %v1312_v10 = vsel %vm1152_vm8, %v1098_v50, %v1666_v36  ;;  %v1667_v58 = vadd.f32 -1.0, %v2065_v18 }
 0x263   :  { %1862 = vmatprep.mubr.f32.mxu1 %v1312_v10  ;;  %v1315_v37 = vsel %vm1155_vm11, %v1109_v40, %v1669_v51 }
 0x264   :  { %v1313_v27 = vsel %vm1153_vm9, %v1101_v55, %v1667_v58 }
 0x265   :  { %1863 = vmatmul.mubr.f32.gmra.mrb[24].mxu1 %v1313_v27 }
 0x266   :  { %1865 = vmatprep.mubr.f32.mxu1 %v1314_v63 }
 0x269   :  { %1866 = vmatmul.mubr.f32.gmra.mrb[26].mxu1 %v1315_v37 }
 0x26c   :  { %v1792_v61 = vpop.f32.mrb[28].mxu0 }
 0x26d   :  { %v1122_v52 = vadd.f32 %v1792_v61, %v2695_v31  ;;  %v1113_v53 = vpop.f32.mrb[29].mxu0 }
 0x26e   :  { %v1114_v62 = vadd.f32 %v2695_v31, %v1113_v53  ;;  %v1793_v29 = vpop.f32.mrb[30].mxu0 }
 0x26f   :  { %v1190_v57 = vmin.f32 %v1122_v52, 0.0  ;;  %v1125_v60 = vadd.f32 %v1793_v29, %v2695_v31  ;;  %v1116_v6 = vpop.f32.mrb[31].mxu0  ;;  %vm1158_vm14 = vcmp.gt.f32.partialorder %v1122_v52, 0.0 }
 0x270   :  { %v1188_v13 = vmin.f32 %v1114_v62, 0.0  ;;  %v1117_v3 = vadd.f32 %v2695_v31, %v1116_v6  ;;  %vm1156_vm12 = vcmp.gt.f32.partialorder %v1114_v62, 0.0 }
 0x271   :  { %v1252_v41 = vmul.f32 1.442695, %v1190_v57  ;;  %v1191_v5 = vmin.f32 %v1125_v60, 0.0  ;;  %vm1159_vm15 = vcmp.gt.f32.partialorder %v1125_v60, 0.0 }
 0x272   :  { %v1248_v42 = vmul.f32 1.442695, %v1188_v13  ;;  %v1189_v2 = vmin.f32 %v1117_v3, 0.0  ;;  %vm1157_vm13 = vcmp.gt.f32.partialorder %v1117_v3, 0.0 }
 0x273   :  { %2066 = vpow2.f32 %v1252_v41  ;;  %v1254_v32 = vmul.f32 1.442695, %v1191_v5 }
 0x274   :  { %2068 = vpow2.f32 %v1248_v42  ;;  %v1250_v12 = vmul.f32 1.442695, %v1189_v2 }
 0x275   :  { %2070 = vpow2.f32 %v1254_v32 }
 0x276   :  { %2072 = vpow2.f32 %v1250_v12 }
 0x27d   :  { %v2067_v48 = vpop.eup %2066 }
 0x27e   :  { %v2069_v44 = vpop.eup %2068  ;;  %v1672_v9 = vadd.f32 -1.0, %v2067_v48 }
 0x27f   :  { %v2071_v54 = vpop.eup %2070  ;;  %v1670_v25 = vadd.f32 -1.0, %v2069_v44 }
 0x280   :  { %v2073_v1 = vpop.eup %2072  ;;  %v1673_v17 = vadd.f32 -1.0, %v2071_v54  ;;  %v1318_v49 = vsel %vm1158_vm14, %v1122_v52, %v1672_v9 }
 0x281   :  { %v1316_v56 = vsel %vm1156_vm12, %v1114_v62, %v1670_v25  ;;  %v1671_v15 = vadd.f32 -1.0, %v2073_v1 }
 0x282   :  { %1868 = vmatprep.mubr.f32.mxu1 %v1316_v56  ;;  %v1319_v7 = vsel %vm1159_vm15, %v1125_v60, %v1673_v17 }
 0x283   :  { %v1317_v31 = vsel %vm1157_vm13, %v1117_v3, %v1671_v15 }
 0x284   :  { %1869 = vmatmul.mubr.f32.gmra.mrb[28].mxu1 %v1317_v31 }
 0x285   :  { %1871 = vmatprep.mubr.f32.mxu1 %v1318_v49 }
 0x288   :  { %1872 = vmatmul.mubr.f32.gmra.mrb[30].mxu1 %v1319_v7 }
 0x29f   :  { %v1828_v22 = vpop.f32.mrb[0].mxu1 }
 0x2a0   :  { %v1410_v23 = vadd.f32 %v1828_v22, %v2767_v14  ;;  %v1404_v45 = vpop.f32.mrb[1].mxu1 }
 0x2a1   :  { %v1405_v39 = vadd.f32 %v1404_v45, %v2767_v14 }
 0x2a2   :  { %1565 = vst.msk [vmem:[%s2936_s7 + $0x8] sm:$0xff] %vm1563_vm0, %v1410_v23 }
 0x2a3   :  { %1564 = vst.msk [vmem:[%s2936_s7] sm:$0xff] %vm1563_vm0, %v1405_v39  ;;  %v1831_v28 = vpop.f32.mrb[2].mxu1 }
 0x2a4   :  { %v1420_v30 = vadd.f32 %v1831_v28, %v2767_v14  ;;  %v1414_v24 = vpop.f32.mrb[3].mxu1 }
 0x2a5   :  { %v1415_v46 = vadd.f32 %v1414_v24, %v2767_v14 }
 0x2a6   :  { %1567 = vst.msk [vmem:[%s2936_s7 + $0x18] sm:$0xff] %vm1563_vm0, %v1420_v30 }
 0x2a7   :  { %1566 = vst.msk [vmem:[%s2936_s7 + $0x10] sm:$0xff] %vm1563_vm0, %v1415_v46  ;;  %v1834_v26 = vpop.f32.mrb[4].mxu1 }
 0x2a8   :  { %v1430_v33 = vadd.f32 %v1834_v26, %v2767_v14  ;;  %v1424_v50 = vpop.f32.mrb[5].mxu1 }
 0x2a9   :  { %v1425_v8 = vadd.f32 %v1424_v50, %v2767_v14 }
 0x2aa   :  { %1569 = vst.msk [vmem:[%s2936_s7 + $0x28] sm:$0xff] %vm1563_vm0, %v1430_v33 }
 0x2ab   :  { %1568 = vst.msk [vmem:[%s2936_s7 + $0x20] sm:$0xff] %vm1563_vm0, %v1425_v8  ;;  %v1837_v19 = vpop.f32.mrb[6].mxu1 }
 0x2ac   :  { %v1440_v40 = vadd.f32 %v1837_v19, %v2767_v14  ;;  %v1434_v11 = vpop.f32.mrb[7].mxu1 }
 0x2ad   :  { %v1435_v59 = vadd.f32 %v1434_v11, %v2767_v14 }
 0x2ae   :  { %1571 = vst.msk [vmem:[%s2936_s7 + $0x38] sm:$0xff] %vm1563_vm0, %v1440_v40 }
 0x2af   :  { %1570 = vst.msk [vmem:[%s2936_s7 + $0x30] sm:$0xff] %vm1563_vm0, %v1435_v59 }
 0x2b4   :  { %v1840_v55 = vpop.f32.mrb[8].mxu1 }
 0x2b5   :  { %v1450_v0 = vadd.f32 %v1840_v55, %v2767_v14  ;;  %v1444_v16 = vpop.f32.mrb[9].mxu1 }
 0x2b6   :  { %v1445_v34 = vadd.f32 %v1444_v16, %v2767_v14 }
 0x2b7   :  { %1573 = vst.msk [vmem:[%s2936_s7 + $0x48] sm:$0xff] %vm1563_vm0, %v1450_v0 }
 0x2b8   :  { %1572 = vst.msk [vmem:[%s2936_s7 + $0x40] sm:$0xff] %vm1563_vm0, %v1445_v34  ;;  %v1843_v35 = vpop.f32.mrb[10].mxu1 }
 0x2b9   :  { %v1460_v38 = vadd.f32 %v1843_v35, %v2767_v14  ;;  %v1454_v47 = vpop.f32.mrb[11].mxu1 }
 0x2ba   :  { %v1455_v43 = vadd.f32 %v1454_v47, %v2767_v14 }
 0x2bb   :  { %1575 = vst.msk [vmem:[%s2936_s7 + $0x58] sm:$0xff] %vm1563_vm0, %v1460_v38 }
 0x2bc   :  { %1574 = vst.msk [vmem:[%s2936_s7 + $0x50] sm:$0xff] %vm1563_vm0, %v1455_v43 }
 0x2d3   :  { %v1846_v21 = vpop.f32.mrb[12].mxu1 }
 0x2d4   :  { %v1470_v20 = vadd.f32 %v1846_v21, %v2767_v14  ;;  %v1464_v36 = vpop.f32.mrb[13].mxu1 }
 0x2d5   :  { %v1465_v18 = vadd.f32 %v1464_v36, %v2767_v14 }
 0x2d6   :  { %1577 = vst.msk [vmem:[%s2936_s7 + $0x68] sm:$0xff] %vm1563_vm0, %v1470_v20 }
 0x2d7   :  { %1576 = vst.msk [vmem:[%s2936_s7 + $0x60] sm:$0xff] %vm1563_vm0, %v1465_v18  ;;  %v1849_v4 = vpop.f32.mrb[14].mxu1 }
 0x2d8   :  { %v1480_v10 = vadd.f32 %v1849_v4, %v2767_v14  ;;  %v1474_v58 = vpop.f32.mrb[15].mxu1 }
 0x2d9   :  { %v1475_v27 = vadd.f32 %v1474_v58, %v2767_v14 }
 0x2da   :  { %1579 = vst.msk [vmem:[%s2936_s7 + $0x78] sm:$0xff] %vm1563_vm0, %v1480_v10 }
 0x2db   :  { %1578 = vst.msk [vmem:[%s2936_s7 + $0x70] sm:$0xff] %vm1563_vm0, %v1475_v27 }
 0x2f6   :  { %v1852_v51 = vpop.f32.mrb[16].mxu1 }
 0x2f7   :  { %v1490_v63 = vadd.f32 %v1852_v51, %v2767_v14  ;;  %v1484_v37 = vpop.f32.mrb[17].mxu1 }
 0x2f8   :  { %v1485_v61 = vadd.f32 %v1484_v37, %v2767_v14 }
 0x2f9   :  { %1581 = vst.msk [vmem:[%s2936_s7 + $0x88] sm:$0xff] %vm1563_vm0, %v1490_v63 }
 0x2fa   :  { %1580 = vst.msk [vmem:[%s2936_s7 + $0x80] sm:$0xff] %vm1563_vm0, %v1485_v61  ;;  %v1855_v52 = vpop.f32.mrb[18].mxu1 }
 0x2fb   :  { %v1500_v53 = vadd.f32 %v1855_v52, %v2767_v14  ;;  %v1494_v62 = vpop.f32.mrb[19].mxu1 }
 0x2fc   :  { %v1495_v29 = vadd.f32 %v1494_v62, %v2767_v14 }
 0x2fd   :  { %1583 = vst.msk [vmem:[%s2936_s7 + $0x98] sm:$0xff] %vm1563_vm0, %v1500_v53 }
 0x2fe   :  { %1582 = vst.msk [vmem:[%s2936_s7 + $0x90] sm:$0xff] %vm1563_vm0, %v1495_v29 }
 0x315   :  { %v1858_v57 = vpop.f32.mrb[20].mxu1 }
 0x316   :  { %v1510_v60 = vadd.f32 %v1858_v57, %v2767_v14  ;;  %v1504_v6 = vpop.f32.mrb[21].mxu1 }
 0x317   :  { %v1505_v13 = vadd.f32 %v1504_v6, %v2767_v14 }
 0x318   :  { %1585 = vst.msk [vmem:[%s2936_s7 + $0xa8] sm:$0xff] %vm1563_vm0, %v1510_v60 }
 0x319   :  { %1584 = vst.msk [vmem:[%s2936_s7 + $0xa0] sm:$0xff] %vm1563_vm0, %v1505_v13  ;;  %v1861_v3 = vpop.f32.mrb[22].mxu1 }
 0x31a   :  { %v1520_v41 = vadd.f32 %v1861_v3, %v2767_v14  ;;  %v1514_v5 = vpop.f32.mrb[23].mxu1 }
 0x31b   :  { %v1515_v42 = vadd.f32 %v1514_v5, %v2767_v14 }
 0x31c   :  { %1587 = vst.msk [vmem:[%s2936_s7 + $0xb8] sm:$0xff] %vm1563_vm0, %v1520_v41 }
 0x31d   :  { %1586 = vst.msk [vmem:[%s2936_s7 + $0xb0] sm:$0xff] %vm1563_vm0, %v1515_v42 }
 0x338   :  { %v1864_v2 = vpop.f32.mrb[24].mxu1 }
 0x339   :  { %v1530_v32 = vadd.f32 %v1864_v2, %v2767_v14  ;;  %v1524_v12 = vpop.f32.mrb[25].mxu1 }
 0x33a   :  { %v1525_v48 = vadd.f32 %v1524_v12, %v2767_v14 }
 0x33b   :  { %1589 = vst.msk [vmem:[%s2936_s7 + $0xc8] sm:$0xff] %vm1563_vm0, %v1530_v32 }
 0x33c   :  { %1588 = vst.msk [vmem:[%s2936_s7 + $0xc0] sm:$0xff] %vm1563_vm0, %v1525_v48  ;;  %v1867_v44 = vpop.f32.mrb[26].mxu1 }
 0x33d   :  { %v1540_v54 = vadd.f32 %v1867_v44, %v2767_v14  ;;  %v1534_v25 = vpop.f32.mrb[27].mxu1 }
 0x33e   :  { %v1535_v1 = vadd.f32 %v1534_v25, %v2767_v14 }
 0x33f   :  { %1591 = vst.msk [vmem:[%s2936_s7 + $0xd8] sm:$0xff] %vm1563_vm0, %v1540_v54 }
 0x340   :  { %1590 = vst.msk [vmem:[%s2936_s7 + $0xd0] sm:$0xff] %vm1563_vm0, %v1535_v1 }
 0x357   :  { %v1870_v9 = vpop.f32.mrb[28].mxu1 }
 0x358   :  { %v1550_v56 = vadd.f32 %v1870_v9, %v2767_v14  ;;  %v1544_v15 = vpop.f32.mrb[29].mxu1 }
 0x359   :  { %v1545_v31 = vadd.f32 %v1544_v15, %v2767_v14 }
 0x35a   :  { %1593 = vst.msk [vmem:[%s2936_s7 + $0xe8] sm:$0xff] %vm1563_vm0, %v1550_v56 }
 0x35b   :  { %1592 = vst.msk [vmem:[%s2936_s7 + $0xe0] sm:$0xff] %vm1563_vm0, %v1545_v31  ;;  %v1873_v17 = vpop.f32.mrb[30].mxu1 }
 0x35c   :  { %v1560_v49 = vadd.f32 %v1873_v17, %v2767_v14  ;;  %v1554_v7 = vpop.f32.mrb[31].mxu1 }
 0x35d   :  { %v1555_v22 = vadd.f32 %v1554_v7, %v2767_v14 }
 0x35e   :  { %1595 = vst.msk [vmem:[%s2936_s7 + $0xf8] sm:$0xff] %vm1563_vm0, %v1560_v49 }
 0x35f   :  { %1594 = vst.msk [vmem:[%s2936_s7 + $0xf0] sm:$0xff] %vm1563_vm0, %v1555_v22 }

</bundles_post_ra>
